<compile_context>
chip_gen: v7x
topology: tpu7x:2x2x1
jax: 0.10.0
libtpu: 0.0.40
codegen_flags: <defaults>
</compile_context>

<pallas_src>
import jax
import jax.numpy as jnp
from jax.experimental import pallas as pl
from jax.experimental.pallas import tpu as pltpu

_SUBLANES = 8                     # rows of the free 2-D view (native sublane tile)
_BLOCK_BYTES = 2 * 1024 * 1024    # ~2 MiB per pipelined block (good on v5e/v6e/v7x)
_MIN_PALLAS_N = 1 << 18           # below this, fused XLA affine is already at roofline


def _cdiv(a, b):
    return -(-a // b)


def _round_up(a, m):
    return _cdiv(a, m) * m


def _affine_kernel(x_ref, w_ref, b_ref, o_ref):
    # w/b are (1, 1) SMEM scalars: read once per block, broadcast-FMA on the VPU.
    o_ref[...] = x_ref[...] * w_ref[0, 0] + b_ref[0, 0]


def _linear_forward(x, weight, bias):
    """x: (N, 1) f32; weight: (1, 1) f32 (PyTorch [out, in] layout); bias: (1,) f32."""
    N, F = x.shape
    assert F == 1 and weight.shape == (1, 1) and bias.shape == (1,)

    # Small batches (kernel-launch overhead dominates) and N % 8 != 0 (no free
    # lane-dense 2-D view exists) take XLA's fused x*w+b, which is already at the
    # HBM roofline for this purely bandwidth-bound op.
    if N < _MIN_PALLAS_N or N % _SUBLANES != 0:
        return x * weight.reshape(()) + bias.reshape(())

    R = _SUBLANES
    C = N // R
    x2d = x.reshape(R, C)  # free row-major reinterpretation of the same buffer

    # ~2 MiB blocks, but never fewer than 2 blocks (split ~evenly so both v7x
    # TensorCores get comparable work). block_cols stays a multiple of 128.
    target_cols = _BLOCK_BYTES // (4 * R)
    half_cols = _round_up(_cdiv(C, 2), 128)
    block_cols = max(128, min(target_cols, half_cols))
    grid = (_cdiv(C, block_cols),)  # ragged tail -> masked partial last block

    out2d = pl.pallas_call(
        _affine_kernel,
        out_shape=jax.ShapeDtypeStruct((R, C), x.dtype),
        grid=grid,
        in_specs=[
            pl.BlockSpec((R, block_cols), lambda i: (0, i)),
            pl.BlockSpec(memory_space=pltpu.MemorySpace.SMEM),
            pl.BlockSpec(memory_space=pltpu.MemorySpace.SMEM),
        ],
        out_specs=pl.BlockSpec((R, block_cols), lambda i: (0, i)),
        compiler_params=pltpu.CompilerParams(
            dimension_semantics=("parallel",),          # v7x: shard across both TCs
            vmem_limit_bytes=32 * 1024 * 1024,          # usage ~8 MiB; safe headroom
        ),
    )(x2d, weight.reshape(1, 1), bias.reshape(1, 1))

    # Free reinterpretation back to the module's (N, 1) layout (no copy).
    return out2d.reshape(N, 1)


linear_forward = jax.jit(_linear_forward)


if __name__ == "__main__":
    key = jax.random.PRNGKey(0)
    kx1, kx2, kw, kb = jax.random.split(key, 4)

    # Deterministic parameters matching nn.Linear(1, 1) shapes.
    weight = jax.random.uniform(kw, (1, 1), dtype=jnp.float32, minval=-1.0, maxval=1.0)
    bias = jax.random.uniform(kb, (1,), dtype=jnp.float32, minval=-1.0, maxval=1.0)

    # Case 1: Pallas path — exercises the zero-copy (8, N//8) view, a 2-block
    # "parallel" grid, and the masked partial last block (C not a block multiple).
    n1 = 300_000
    x1 = jax.random.normal(kx1, (n1, 1), dtype=jnp.float32)
    y1 = jax.block_until_ready(linear_forward(x1, weight, bias))
    y1_ref = x1 @ weight.T + bias
    assert y1.shape == (n1, 1)
    assert jnp.allclose(y1, y1_ref, atol=1e-6), "Pallas path mismatch vs reference"

    # Case 2: tiny batch — fused XLA fallback (by design; launch overhead dominates).
    x2 = jax.random.normal(kx2, (8, 1), dtype=jnp.float32)
    y2 = jax.block_until_ready(linear_forward(x2, weight, bias))
    y2_ref = x2 @ weight.T + bias
    assert y2.shape == (8, 1)
    assert jnp.allclose(y2, y2_ref, atol=1e-6), "fallback path mismatch vs reference"

    print("KERNEL_OK")
</pallas_src>

<mosaic_0001>
module attributes {stable_mosaic.version = 11 : i64} {
  func.func @_affine_kernel(%arg0: i32, %arg1: memref<8x18816xf32, #tpu.memory_space<vmem>>, %arg2: memref<1x1xf32, #tpu.memory_space<smem>>, %arg3: memref<1x1xf32, #tpu.memory_space<smem>>, %arg4: memref<8x18816xf32, #tpu.memory_space<vmem>>) attributes {dimension_semantics = [#tpu.dimension_semantics<parallel>], iteration_bounds = array<i64: 2>, scalar_prefetch = 0 : i64, scratch_operands = 0 : i64, tpu.core_type = #tpu.core_type<tc>, window_params = [{transform_indices = @transform_0, window_bounds = array<i64: 8, 18816>}, {transform_indices = @transform_1, window_bounds = array<i64: 1, 1>}, {transform_indices = @transform_2, window_bounds = array<i64: 1, 1>}, {transform_indices = @transform_3, window_bounds = array<i64: 8, 18816>}]} {
    %c0 = arith.constant 0 : index
    %c0_0 = arith.constant 0 : index
    %0 = vector.load %arg1[%c0, %c0_0] : memref<8x18816xf32, #tpu.memory_space<vmem>>, vector<8x18816xf32>
    %c0_1 = arith.constant 0 : index
    %c0_2 = arith.constant 0 : index
    %1 = memref.load %arg2[%c0_1, %c0_2] : memref<1x1xf32, #tpu.memory_space<smem>>
    %2 = vector.broadcast %1 : f32 to vector<8x18816xf32>
    %3 = arith.mulf %0, %2 : vector<8x18816xf32>
    %c0_3 = arith.constant 0 : index
    %c0_4 = arith.constant 0 : index
    %4 = memref.load %arg3[%c0_3, %c0_4] : memref<1x1xf32, #tpu.memory_space<smem>>
    %5 = vector.broadcast %4 : f32 to vector<8x18816xf32>
    %6 = arith.addf %3, %5 : vector<8x18816xf32>
    %c0_5 = arith.constant 0 : index
    %c0_6 = arith.constant 0 : index
    %7 = vector.load %arg4[%c0_5, %c0_6] : memref<8x18816xf32, #tpu.memory_space<vmem>>, vector<8x18816xf32>
    tpu.vector_store %arg4[%c0_5, %c0_6], %6 {strides = array<i32>} : memref<8x18816xf32, #tpu.memory_space<vmem>>, vector<8x18816xf32>,
    return
  }
  func.func @transform_0(%arg0: i32) -> (i32, i32) {
    %c0_i32 = arith.constant 0 : i32
    %c0_i32_0 = arith.constant 0 : i32
    return %c0_i32, %arg0 : i32, i32
  }
  func.func @transform_1(%arg0: i32) -> (i32, i32) {
    %c0_i32 = arith.constant 0 : i32
    %c0_i32_0 = arith.constant 0 : i32
    %c0_i32_1 = arith.constant 0 : i32
    return %c0_i32, %c0_i32_0 : i32, i32
  }
  func.func @transform_2(%arg0: i32) -> (i32, i32) {
    %c0_i32 = arith.constant 0 : i32
    %c0_i32_0 = arith.constant 0 : i32
    %c0_i32_1 = arith.constant 0 : i32
    return %c0_i32, %c0_i32_0 : i32, i32
  }
  func.func @transform_3(%arg0: i32) -> (i32, i32) {
    %c0_i32 = arith.constant 0 : i32
    %c0_i32_0 = arith.constant 0 : i32
    return %c0_i32, %arg0 : i32, i32
  }
}

</mosaic_0001>

<bundles_post_ra>
// kernel: _linear_forward.1
= control target key start
LH: loop header
LB: loop body
LE: loop exit
PB: predicated region body
PF: predicated region fallthrough
CT: control target
= control target key end

     0   :  { %s2762_s0 = inlined_call_operand.vmem [shape: f32[8,37500], index: 0, kind: input, shape index: {}]   ;;  %s2763_s1 = inlined_call_operand.<no memory space> [shape: f32[1,1], index: 1, kind: input, shape index: {}]   ;;  %s2764_s2 = inlined_call_operand.<no memory space> [shape: f32[1,1], index: 2, kind: input, shape index: {}]   ;;  %s2765_s3 = inlined_call_operand.vmem [shape: f32[8,37500], index: 3, kind: output, shape index: {}]  }
   0x1   :  { %8 = sst [smem:[#allocation2]] %s2763_s1 }
   0x2   :  { %9 = sst [smem:[#allocation3]] %s2764_s2 }
   0x3   :  { %s1707_s16 = smov 0   ;;  %s1709_s17 = smov 0  }
   0x4   :  { %s1711_s18 = smov 0  }
   0x5 LB: > { %s1718_s1 = sadd.s32 4294967295, %s1613_s18   ;;  %s1720_s2 = sadd.s32 1, %s1613_s18   ;;  %s1613_s18 = sphi %s1711_s18, %s2779_s18   ;;  %s1609_s17 = sphi %s1709_s17, %s2778_s17   ;;  %s1605_s16 = sphi %s1707_s16, %s2777_s16  }
   0x6   : > { %s87_s19 = ssub.s32 %s1613_s18, %s1720_s2  ;;  %s90_s20 = sadd.s32 1, %s1609_s17 }
   0x7   : > { %p88_p0 = scmp.eq.s32.totalorder %s87_s19, 0  ;;  %p100_p1 = scmp.ne.s32.totalorder %s1609_s17, %s1605_s16 }
   0x8   : > { %p101_p2 = scmp.eq.s32.totalorder %s1718_s1, 1  ;;  %p1338_p3 = scmp.ge.s32.totalorder %s1613_s18, 1 }
   0x9   : > { %s1727_s21 = scalar_select %p88_p0, %s1609_s17, %s90_s20  }
   0xa   : > { %p1729_p4 = por %p101_p2, %p100_p1  ;;  %p148_p5 = scmp.lt.s32.totalorder %s1613_s18, 3 }
   0xc   : > { %p149_p6 = pnand %p1338_p3, %p148_p5 }
   0xd   : > { %s1734_s23 = smul.u32 (!%p149_p6), 147, %s1718_s1  ;;  %s341_s24 = sld [smem:[#allocation2]] (!%p149_p6) }
   0xe   : > { %152 = sbr.rel (%p149_p6) target bundleno = 282 (0x11a), region = 32  ;;  %s490_s25 = sld [smem:[#allocation3]] (!%p149_p6) }
   0xf   : > { %p180_p7 = scmp.lt.s32.totalorder (!%p149_p6), %s1734_s23, 292  ;;  %s172_s26 = sand.u32 (!%p149_p6), 1, %s1605_s16  }
  0x10   : > { %s1738_s28 = smul.u32 (!%p149_p6), 1176, %s172_s26 }
  0x12   : > { %s1779_s6 = scalar_lea.vmem (!%p149_p6), [#allocation4], %s1738_s28  }
  0x13   : > { %v1745_v0 = vstv (!%p149_p6), %s341_s24 }
  0x14   : > { %v1748_v2 = vstv (!%p149_p6), %s490_s25 }
  0x15   : > { %s181_s27 = scalar_select %p180_p7, %s1734_s23, 292 }
  0x16   : > { %s794_s7 = ssub.s32 (%p1729_p4), 293, %s1734_s23  ;;  %s1367_s8 = smul.u32 (%p1729_p4), 1176, %s1718_s1 }
  0x17   : > { %s1339_s29 = sshll.u32 %s181_s27, 3  ;;  %p795_p8 = scmp.lt.s32.totalorder (%p1729_p4), %s794_s7, 147 }
  0x18   : > { %s1743_s5 = scalar_lea.vmem %s2762_s0, %s1339_s29  ;;  %s2347_s11 = scalar_lea.vmem (%p1729_p4), %s2765_s3, %s1367_s8  }
  0x19   : > { %v194_v1 = vld [vmem:[%s1743_s5] sm:$0xff]  ;;  %v195_v3 = vld [vmem:[%s1743_s5 + $0x8] sm:$0xff]  ;;  %v196_v4 = vld [vmem:[%s1743_s5 + $0x10] sm:$0xff] }
  0x1a   : > { %v343_v5 = vmul.f32 %v1745_v0, %v194_v1  ;;  %v344_v6 = vmul.f32 %v1745_v0, %v195_v3  ;;  %v345_v7 = vmul.f32 %v1745_v0, %v196_v4  ;;  %v197_v8 = vld [vmem:[%s1743_s5 + $0x18] sm:$0xff]  ;;  %v198_v9 = vld [vmem:[%s1743_s5 + $0x20] sm:$0xff]  ;;  %v199_v10 = vld [vmem:[%s1743_s5 + $0x28] sm:$0xff] }
  0x1b   : > { %v346_v11 = vmul.f32 %v1745_v0, %v197_v8  ;;  %v347_v12 = vmul.f32 %v1745_v0, %v198_v9  ;;  %v348_v13 = vmul.f32 %v1745_v0, %v199_v10  ;;  %v200_v14 = vld [vmem:[%s1743_s5 + $0x30] sm:$0xff]  ;;  %v201_v15 = vld [vmem:[%s1743_s5 + $0x38] sm:$0xff]  ;;  %v202_v16 = vld [vmem:[%s1743_s5 + $0x40] sm:$0xff] }
  0x1c   : > { %v492_v17 = vadd.f32 %v1748_v2, %v343_v5  ;;  %v493_v18 = vadd.f32 %v1748_v2, %v344_v6  ;;  %v494_v19 = vadd.f32 %v1748_v2, %v345_v7  ;;  %v349_v20 = vmul.f32 %v1745_v0, %v200_v14  ;;  %v203_v21 = vld [vmem:[%s1743_s5 + $0x48] sm:$0xff]  ;;  %v204_v22 = vld [vmem:[%s1743_s5 + $0x50] sm:$0xff]  ;;  %v205_v23 = vld [vmem:[%s1743_s5 + $0x58] sm:$0xff] }
  0x1d   : > { %v495_v24 = vadd.f32 %v1748_v2, %v346_v11  ;;  %v496_v25 = vadd.f32 %v1748_v2, %v347_v12  ;;  %v497_v26 = vadd.f32 %v1748_v2, %v348_v13  ;;  %v350_v27 = vmul.f32 %v1745_v0, %v201_v15  ;;  %v206_v28 = vld [vmem:[%s1743_s5 + $0x60] sm:$0xff]  ;;  %v207_v29 = vld [vmem:[%s1743_s5 + $0x68] sm:$0xff]  ;;  %v208_v30 = vld [vmem:[%s1743_s5 + $0x70] sm:$0xff] }
  0x1e   : > { %639 = vst [vmem:[%s1779_s6] sm:$0xff] %v492_v17  ;;  %640 = vst [vmem:[%s1779_s6 + $0x8] sm:$0xff] %v493_v18  ;;  %v498_v31 = vadd.f32 %v1748_v2, %v349_v20  ;;  %v351_v32 = vmul.f32 %v1745_v0, %v202_v16  ;;  %v352_v33 = vmul.f32 %v1745_v0, %v203_v21  ;;  %v209_v35 = vld [vmem:[%s1743_s5 + $0x78] sm:$0xff]  ;;  %v210_v40 = vld [vmem:[%s1743_s5 + $0x80] sm:$0xff] }
  0x1f   : > { %641 = vst [vmem:[%s1779_s6 + $0x10] sm:$0xff] %v494_v19  ;;  %v353_v34 = vmul.f32 %v1745_v0, %v204_v22  ;;  %642 = vst [vmem:[%s1779_s6 + $0x18] sm:$0xff] %v495_v24  ;;  %v499_v36 = vadd.f32 %v1748_v2, %v350_v27  ;;  %v354_v37 = vmul.f32 %v1745_v0, %v205_v23  ;;  %v211_v41 = vld [vmem:[%s1743_s5 + $0x88] sm:$0xff]  ;;  %v212_v42 = vld [vmem:[%s1743_s5 + $0x90] sm:$0xff] }
  0x20   : > { %643 = vst [vmem:[%s1779_s6 + $0x20] sm:$0xff] %v496_v25  ;;  %644 = vst [vmem:[%s1779_s6 + $0x28] sm:$0xff] %v497_v26  ;;  %v355_v38 = vmul.f32 %v1745_v0, %v206_v28  ;;  %v356_v39 = vmul.f32 %v1745_v0, %v207_v29  ;;  %v500_v43 = vadd.f32 %v1748_v2, %v351_v32  ;;  %v213_v47 = vld [vmem:[%s1743_s5 + $0x98] sm:$0xff]  ;;  %v214_v48 = vld [vmem:[%s1743_s5 + $0xa0] sm:$0xff] }
  0x21   : > { %645 = vst [vmem:[%s1779_s6 + $0x30] sm:$0xff] %v498_v31  ;;  %v501_v44 = vadd.f32 %v1748_v2, %v352_v33  ;;  %v502_v45 = vadd.f32 %v1748_v2, %v353_v34  ;;  %v357_v46 = vmul.f32 %v1745_v0, %v208_v30  ;;  %v215_v49 = vld [vmem:[%s1743_s5 + $0xa8] sm:$0xff]  ;;  %646 = vst [vmem:[%s1779_s6 + $0x38] sm:$0xff] %v499_v36  ;;  %v216_v54 = vld [vmem:[%s1743_s5 + $0xb0] sm:$0xff] }
  0x22   : > { %v503_v50 = vadd.f32 %v1748_v2, %v354_v37  ;;  %v504_v51 = vadd.f32 %v1748_v2, %v355_v38  ;;  %v505_v52 = vadd.f32 %v1748_v2, %v356_v39  ;;  %v358_v53 = vmul.f32 %v1745_v0, %v209_v35  ;;  %647 = vst [vmem:[%s1779_s6 + $0x40] sm:$0xff] %v500_v43  ;;  %v217_v59 = vld [vmem:[%s1743_s5 + $0xb8] sm:$0xff]  ;;  %v218_v1 = vld [vmem:[%s1743_s5 + $0xc0] sm:$0xff]  ;;  %v219_v3 = vld [vmem:[%s1743_s5 + $0xc8] sm:$0xff] }
  0x23   : > { %648 = vst [vmem:[%s1779_s6 + $0x48] sm:$0xff] %v501_v44  ;;  %649 = vst [vmem:[%s1779_s6 + $0x50] sm:$0xff] %v502_v45  ;;  %v506_v55 = vadd.f32 %v1748_v2, %v357_v46  ;;  %v359_v56 = vmul.f32 %v1745_v0, %v210_v40  ;;  %v360_v57 = vmul.f32 %v1745_v0, %v211_v41  ;;  %v220_v4 = vld [vmem:[%s1743_s5 + $0xd0] sm:$0xff]  ;;  %v221_v9 = vld [vmem:[%s1743_s5 + $0xd8] sm:$0xff] }
  0x24   : > { %v361_v58 = vmul.f32 %v1745_v0, %v212_v42  ;;  %650 = vst [vmem:[%s1779_s6 + $0x58] sm:$0xff] %v503_v50  ;;  %651 = vst [vmem:[%s1779_s6 + $0x60] sm:$0xff] %v504_v51  ;;  %v507_v60 = vadd.f32 %v1748_v2, %v358_v53  ;;  %v362_v61 = vmul.f32 %v1745_v0, %v213_v47  ;;  %v222_v10 = vld [vmem:[%s1743_s5 + $0xe0] sm:$0xff]  ;;  %v223_v11 = vld [vmem:[%s1743_s5 + $0xe8] sm:$0xff] }
  0x25   : > { %652 = vst [vmem:[%s1779_s6 + $0x68] sm:$0xff] %v505_v52  ;;  %v363_v62 = vmul.f32 %v1745_v0, %v214_v48  ;;  %v364_v63 = vmul.f32 %v1745_v0, %v215_v49  ;;  %653 = vst [vmem:[%s1779_s6 + $0x70] sm:$0xff] %v506_v55  ;;  %v508_v5 = vadd.f32 %v1748_v2, %v359_v56  ;;  %v224_v16 = vld [vmem:[%s1743_s5 + $0xf0] sm:$0xff]  ;;  %v225_v21 = vld [vmem:[%s1743_s5 + $0xf8] sm:$0xff] }
  0x26   : > { %v509_v6 = vadd.f32 %v1748_v2, %v360_v57  ;;  %v510_v7 = vadd.f32 %v1748_v2, %v361_v58  ;;  %v365_v8 = vmul.f32 %v1745_v0, %v216_v54  ;;  %654 = vst [vmem:[%s1779_s6 + $0x78] sm:$0xff] %v507_v60  ;;  %v511_v12 = vadd.f32 %v1748_v2, %v362_v61  ;;  %v226_v26 = vld [vmem:[%s1743_s5 + $0x100] sm:$0xff]  ;;  %v227_v27 = vld [vmem:[%s1743_s5 + $0x108] sm:$0xff]  ;;  %v228_v28 = vld [vmem:[%s1743_s5 + $0x110] sm:$0xff] }
  0x27   : > { %v512_v13 = vadd.f32 %v1748_v2, %v363_v62  ;;  %v513_v14 = vadd.f32 %v1748_v2, %v364_v63  ;;  %v366_v15 = vmul.f32 %v1745_v0, %v217_v59  ;;  %655 = vst [vmem:[%s1779_s6 + $0x80] sm:$0xff] %v508_v5  ;;  %v367_v18 = vmul.f32 %v1745_v0, %v218_v1  ;;  %v229_v33 = vld [vmem:[%s1743_s5 + $0x118] sm:$0xff]  ;;  %v230_v34 = vld [vmem:[%s1743_s5 + $0x120] sm:$0xff]  ;;  %v231_v35 = vld [vmem:[%s1743_s5 + $0x128] sm:$0xff] }
  0x28   : > { %656 = vst [vmem:[%s1779_s6 + $0x88] sm:$0xff] %v509_v6  ;;  %657 = vst [vmem:[%s1779_s6 + $0x90] sm:$0xff] %v510_v7  ;;  %v514_v17 = vadd.f32 %v1748_v2, %v365_v8  ;;  %v368_v19 = vmul.f32 %v1745_v0, %v219_v3  ;;  %v369_v20 = vmul.f32 %v1745_v0, %v220_v4  ;;  %v232_v40 = vld [vmem:[%s1743_s5 + $0x130] sm:$0xff]  ;;  %v233_v45 = vld [vmem:[%s1743_s5 + $0x138] sm:$0xff] }
  0x29   : > { %658 = vst [vmem:[%s1779_s6 + $0x98] sm:$0xff] %v511_v12  ;;  %659 = vst [vmem:[%s1779_s6 + $0xa0] sm:$0xff] %v512_v13  ;;  %v515_v22 = vadd.f32 %v1748_v2, %v366_v15  ;;  %v370_v23 = vmul.f32 %v1745_v0, %v221_v9  ;;  %v371_v24 = vmul.f32 %v1745_v0, %v222_v10  ;;  %v234_v50 = vld [vmem:[%s1743_s5 + $0x140] sm:$0xff]  ;;  %v235_v51 = vld [vmem:[%s1743_s5 + $0x148] sm:$0xff] }
  0x2a   : > { %660 = vst [vmem:[%s1779_s6 + $0xa8] sm:$0xff] %v513_v14  ;;  %v372_v25 = vmul.f32 %v1745_v0, %v223_v11  ;;  %661 = vst [vmem:[%s1779_s6 + $0xb0] sm:$0xff] %v514_v17  ;;  %v516_v29 = vadd.f32 %v1748_v2, %v367_v18  ;;  %v517_v30 = vadd.f32 %v1748_v2, %v368_v19  ;;  %v236_v52 = vld [vmem:[%s1743_s5 + $0x150] sm:$0xff]  ;;  %v237_v57 = vld [vmem:[%s1743_s5 + $0x158] sm:$0xff] }
  0x2b   : > { %v518_v31 = vadd.f32 %v1748_v2, %v369_v20  ;;  %v373_v32 = vmul.f32 %v1745_v0, %v224_v16  ;;  %662 = vst [vmem:[%s1779_s6 + $0xb8] sm:$0xff] %v515_v22  ;;  %v519_v36 = vadd.f32 %v1748_v2, %v370_v23  ;;  %v520_v37 = vadd.f32 %v1748_v2, %v371_v24  ;;  %v238_v58 = vld [vmem:[%s1743_s5 + $0x160] sm:$0xff]  ;;  %v239_v59 = vld [vmem:[%s1743_s5 + $0x168] sm:$0xff]  ;;  %v240_v1 = vld [vmem:[%s1743_s5 + $0x170] sm:$0xff] }
  0x2c   : > { %v521_v38 = vadd.f32 %v1748_v2, %v372_v25  ;;  %v374_v39 = vmul.f32 %v1745_v0, %v225_v21  ;;  %663 = vst [vmem:[%s1779_s6 + $0xc0] sm:$0xff] %v516_v29  ;;  %664 = vst [vmem:[%s1779_s6 + $0xc8] sm:$0xff] %v517_v30  ;;  %v375_v42 = vmul.f32 %v1745_v0, %v226_v26  ;;  %v241_v7 = vld [vmem:[%s1743_s5 + $0x178] sm:$0xff]  ;;  %v242_v12 = vld [vmem:[%s1743_s5 + $0x180] sm:$0xff] }
  0x2d   : > { %665 = vst [vmem:[%s1779_s6 + $0xd0] sm:$0xff] %v518_v31  ;;  %v522_v41 = vadd.f32 %v1748_v2, %v373_v32  ;;  %v376_v43 = vmul.f32 %v1745_v0, %v227_v27  ;;  %v377_v44 = vmul.f32 %v1745_v0, %v228_v28  ;;  %666 = vst [vmem:[%s1779_s6 + $0xd8] sm:$0xff] %v519_v36  ;;  %v243_v13 = vld [vmem:[%s1743_s5 + $0x188] sm:$0xff]  ;;  %v244_v14 = vld [vmem:[%s1743_s5 + $0x190] sm:$0xff] }
  0x2e   : > { %667 = vst [vmem:[%s1779_s6 + $0xe0] sm:$0xff] %v520_v37  ;;  %668 = vst [vmem:[%s1779_s6 + $0xe8] sm:$0xff] %v521_v38  ;;  %v523_v46 = vadd.f32 %v1748_v2, %v374_v39  ;;  %v378_v47 = vmul.f32 %v1745_v0, %v229_v33  ;;  %v379_v48 = vmul.f32 %v1745_v0, %v230_v34  ;;  %v245_v19 = vld [vmem:[%s1743_s5 + $0x198] sm:$0xff]  ;;  %v246_v20 = vld [vmem:[%s1743_s5 + $0x1a0] sm:$0xff] }
  0x2f   : > { %v380_v49 = vmul.f32 %v1745_v0, %v231_v35  ;;  %669 = vst [vmem:[%s1779_s6 + $0xf0] sm:$0xff] %v522_v41  ;;  %v524_v53 = vadd.f32 %v1748_v2, %v375_v42  ;;  %v525_v54 = vadd.f32 %v1748_v2, %v376_v43  ;;  %v526_v55 = vadd.f32 %v1748_v2, %v377_v44  ;;  %v247_v21 = vld [vmem:[%s1743_s5 + $0x1a8] sm:$0xff]  ;;  %v248_v26 = vld [vmem:[%s1743_s5 + $0x1b0] sm:$0xff]  ;;  %v249_v31 = vld [vmem:[%s1743_s5 + $0x1b8] sm:$0xff] }
  0x30   : > { %v381_v56 = vmul.f32 %v1745_v0, %v232_v40  ;;  %670 = vst [vmem:[%s1779_s6 + $0xf8] sm:$0xff] %v523_v46  ;;  %v527_v60 = vadd.f32 %v1748_v2, %v378_v47  ;;  %v528_v61 = vadd.f32 %v1748_v2, %v379_v48  ;;  %v382_v63 = vmul.f32 %v1745_v0, %v233_v45  ;;  %v250_v36 = vld [vmem:[%s1743_s5 + $0x1c0] sm:$0xff]  ;;  %v251_v37 = vld [vmem:[%s1743_s5 + $0x1c8] sm:$0xff]  ;;  %v252_v38 = vld [vmem:[%s1743_s5 + $0x1d0] sm:$0xff] }
  0x31   : > { %v529_v62 = vadd.f32 %v1748_v2, %v380_v49  ;;  %671 = vst [vmem:[%s1779_s6 + $0x100] sm:$0xff] %v524_v53  ;;  %672 = vst [vmem:[%s1779_s6 + $0x108] sm:$0xff] %v525_v54  ;;  %v383_v4 = vmul.f32 %v1745_v0, %v234_v50  ;;  %v384_v5 = vmul.f32 %v1745_v0, %v235_v51  ;;  %v253_v43 = vld [vmem:[%s1743_s5 + $0x1d8] sm:$0xff]  ;;  %v254_v44 = vld [vmem:[%s1743_s5 + $0x1e0] sm:$0xff] }
  0x32   : > { %673 = vst [vmem:[%s1779_s6 + $0x110] sm:$0xff] %v526_v55  ;;  %v530_v3 = vadd.f32 %v1748_v2, %v381_v56  ;;  %v385_v6 = vmul.f32 %v1745_v0, %v236_v52  ;;  %674 = vst [vmem:[%s1779_s6 + $0x118] sm:$0xff] %v527_v60  ;;  %v531_v8 = vadd.f32 %v1748_v2, %v382_v63  ;;  %v255_v45 = vld [vmem:[%s1743_s5 + $0x1e8] sm:$0xff]  ;;  %v256_v50 = vld [vmem:[%s1743_s5 + $0x1f0] sm:$0xff] }
  0x33   : > { %675 = vst [vmem:[%s1779_s6 + $0x120] sm:$0xff] %v528_v61  ;;  %676 = vst [vmem:[%s1779_s6 + $0x128] sm:$0xff] %v529_v62  ;;  %v386_v9 = vmul.f32 %v1745_v0, %v237_v57  ;;  %v387_v10 = vmul.f32 %v1745_v0, %v238_v58  ;;  %v388_v11 = vmul.f32 %v1745_v0, %v239_v59  ;;  %v257_v55 = vld [vmem:[%s1743_s5 + $0x1f8] sm:$0xff]  ;;  %v258_v60 = vld [vmem:[%s1743_s5 + $0x200] sm:$0xff] }
  0x34   : > { %677 = vst [vmem:[%s1779_s6 + $0x130] sm:$0xff] %v530_v3  ;;  %v532_v15 = vadd.f32 %v1748_v2, %v383_v4  ;;  %v533_v16 = vadd.f32 %v1748_v2, %v384_v5  ;;  %v534_v17 = vadd.f32 %v1748_v2, %v385_v6  ;;  %v389_v18 = vmul.f32 %v1745_v0, %v240_v1  ;;  %v259_v61 = vld [vmem:[%s1743_s5 + $0x208] sm:$0xff]  ;;  %v260_v62 = vld [vmem:[%s1743_s5 + $0x210] sm:$0xff]  ;;  %v261_v5 = vld [vmem:[%s1743_s5 + $0x218] sm:$0xff] }
  0x35   : > { %678 = vst [vmem:[%s1779_s6 + $0x138] sm:$0xff] %v531_v8  ;;  %v535_v22 = vadd.f32 %v1748_v2, %v386_v9  ;;  %v536_v23 = vadd.f32 %v1748_v2, %v387_v10  ;;  %v537_v24 = vadd.f32 %v1748_v2, %v388_v11  ;;  %v390_v25 = vmul.f32 %v1745_v0, %v241_v7  ;;  %v262_v6 = vld [vmem:[%s1743_s5 + $0x220] sm:$0xff]  ;;  %v263_v7 = vld [vmem:[%s1743_s5 + $0x228] sm:$0xff] }
  0x36   : > { %679 = vst [vmem:[%s1779_s6 + $0x140] sm:$0xff] %v532_v15  ;;  %680 = vst [vmem:[%s1779_s6 + $0x148] sm:$0xff] %v533_v16  ;;  %v538_v27 = vadd.f32 %v1748_v2, %v389_v18  ;;  %v391_v28 = vmul.f32 %v1745_v0, %v242_v12  ;;  %v392_v29 = vmul.f32 %v1745_v0, %v243_v13  ;;  %v264_v12 = vld [vmem:[%s1743_s5 + $0x230] sm:$0xff] }
  0x37   : > { %681 = vst [vmem:[%s1779_s6 + $0x150] sm:$0xff] %v534_v17  ;;  %v393_v30 = vmul.f32 %v1745_v0, %v244_v14  ;;  %682 = vst [vmem:[%s1779_s6 + $0x158] sm:$0xff] %v535_v22  ;;  %v539_v32 = vadd.f32 %v1748_v2, %v390_v25  ;;  %v394_v33 = vmul.f32 %v1745_v0, %v245_v19  ;;  %v265_v17 = vld [vmem:[%s1743_s5 + $0x238] sm:$0xff]  ;;  %v266_v22 = vld [vmem:[%s1743_s5 + $0x240] sm:$0xff] }
  0x38   : > { %683 = vst [vmem:[%s1779_s6 + $0x160] sm:$0xff] %v536_v23  ;;  %684 = vst [vmem:[%s1779_s6 + $0x168] sm:$0xff] %v537_v24  ;;  %v395_v34 = vmul.f32 %v1745_v0, %v246_v20  ;;  %v396_v35 = vmul.f32 %v1745_v0, %v247_v21  ;;  %v540_v39 = vadd.f32 %v1748_v2, %v391_v28  ;;  %v267_v23 = vld [vmem:[%s1743_s5 + $0x248] sm:$0xff]  ;;  %v268_v24 = vld [vmem:[%s1743_s5 + $0x250] sm:$0xff] }
  0x39   : > { %685 = vst [vmem:[%s1779_s6 + $0x170] sm:$0xff] %v538_v27  ;;  %v541_v40 = vadd.f32 %v1748_v2, %v392_v29  ;;  %v542_v41 = vadd.f32 %v1748_v2, %v393_v30  ;;  %v397_v42 = vmul.f32 %v1745_v0, %v248_v26  ;;  %686 = vst [vmem:[%s1779_s6 + $0x178] sm:$0xff] %v539_v32  ;;  %v269_v29 = vld [vmem:[%s1743_s5 + $0x258] sm:$0xff]  ;;  %v270_v30 = vld [vmem:[%s1743_s5 + $0x260] sm:$0xff] }
  0x3a   : > { %v543_v46 = vadd.f32 %v1748_v2, %v394_v33  ;;  %v544_v47 = vadd.f32 %v1748_v2, %v395_v34  ;;  %v545_v48 = vadd.f32 %v1748_v2, %v396_v35  ;;  %v398_v49 = vmul.f32 %v1745_v0, %v249_v31  ;;  %687 = vst [vmem:[%s1779_s6 + $0x180] sm:$0xff] %v540_v39  ;;  %v271_v31 = vld [vmem:[%s1743_s5 + $0x268] sm:$0xff] }
  0x3b   : > { %688 = vst [vmem:[%s1779_s6 + $0x188] sm:$0xff] %v541_v40  ;;  %689 = vst [vmem:[%s1779_s6 + $0x190] sm:$0xff] %v542_v41  ;;  %v546_v51 = vadd.f32 %v1748_v2, %v397_v42  ;;  %v399_v52 = vmul.f32 %v1745_v0, %v250_v36  ;;  %v400_v53 = vmul.f32 %v1745_v0, %v251_v37  ;;  %v272_v36 = vld [vmem:[%s1743_s5 + $0x270] sm:$0xff]  ;;  %v273_v41 = vld [vmem:[%s1743_s5 + $0x278] sm:$0xff] }
  0x3c   : > { %v401_v54 = vmul.f32 %v1745_v0, %v252_v38  ;;  %690 = vst [vmem:[%s1779_s6 + $0x198] sm:$0xff] %v543_v46  ;;  %691 = vst [vmem:[%s1779_s6 + $0x1a0] sm:$0xff] %v544_v47  ;;  %v547_v56 = vadd.f32 %v1748_v2, %v398_v49  ;;  %v402_v57 = vmul.f32 %v1745_v0, %v253_v43  ;;  %v274_v46 = vld [vmem:[%s1743_s5 + $0x280] sm:$0xff]  ;;  %v275_v47 = vld [vmem:[%s1743_s5 + $0x288] sm:$0xff] }
  0x3d   : > { %692 = vst [vmem:[%s1779_s6 + $0x1a8] sm:$0xff] %v545_v48  ;;  %v403_v58 = vmul.f32 %v1745_v0, %v254_v44  ;;  %v404_v59 = vmul.f32 %v1745_v0, %v255_v45  ;;  %693 = vst [vmem:[%s1779_s6 + $0x1b0] sm:$0xff] %v546_v51  ;;  %v548_v63 = vadd.f32 %v1748_v2, %v399_v52  ;;  %v276_v48 = vld [vmem:[%s1743_s5 + $0x290] sm:$0xff] }
  0x3e   : > { %v549_v1 = vadd.f32 %v1748_v2, %v400_v53  ;;  %v550_v3 = vadd.f32 %v1748_v2, %v401_v54  ;;  %v405_v4 = vmul.f32 %v1745_v0, %v256_v50  ;;  %694 = vst [vmem:[%s1779_s6 + $0x1b8] sm:$0xff] %v547_v56  ;;  %v551_v8 = vadd.f32 %v1748_v2, %v402_v57  ;;  %v277_v53 = vld [vmem:[%s1743_s5 + $0x298] sm:$0xff]  ;;  %v278_v54 = vld [vmem:[%s1743_s5 + $0x2a0] sm:$0xff] }
  0x3f   : > { %v552_v9 = vadd.f32 %v1748_v2, %v403_v58  ;;  %v553_v10 = vadd.f32 %v1748_v2, %v404_v59  ;;  %v406_v11 = vmul.f32 %v1745_v0, %v257_v55  ;;  %695 = vst [vmem:[%s1779_s6 + $0x1c0] sm:$0xff] %v548_v63  ;;  %v407_v14 = vmul.f32 %v1745_v0, %v258_v60  ;;  %v279_v55 = vld [vmem:[%s1743_s5 + $0x2a8] sm:$0xff]  ;;  %v280_v60 = vld [vmem:[%s1743_s5 + $0x2b0] sm:$0xff] }
  0x40   : > { %696 = vst [vmem:[%s1779_s6 + $0x1c8] sm:$0xff] %v549_v1  ;;  %697 = vst [vmem:[%s1779_s6 + $0x1d0] sm:$0xff] %v550_v3  ;;  %v554_v13 = vadd.f32 %v1748_v2, %v405_v4  ;;  %v408_v15 = vmul.f32 %v1745_v0, %v259_v61  ;;  %v409_v16 = vmul.f32 %v1745_v0, %v260_v62  ;;  %v281_v3 = vld [vmem:[%s1743_s5 + $0x2b8] sm:$0xff] }
  0x41   : > { %698 = vst [vmem:[%s1779_s6 + $0x1d8] sm:$0xff] %v551_v8  ;;  %699 = vst [vmem:[%s1779_s6 + $0x1e0] sm:$0xff] %v552_v9  ;;  %v555_v18 = vadd.f32 %v1748_v2, %v406_v11  ;;  %v410_v19 = vmul.f32 %v1745_v0, %v261_v5  ;;  %v411_v20 = vmul.f32 %v1745_v0, %v262_v6  ;;  %v282_v8 = vld [vmem:[%s1743_s5 + $0x2c0] sm:$0xff]  ;;  %v283_v9 = vld [vmem:[%s1743_s5 + $0x2c8] sm:$0xff] }
  0x42   : > { %700 = vst [vmem:[%s1779_s6 + $0x1e8] sm:$0xff] %v553_v10  ;;  %v412_v21 = vmul.f32 %v1745_v0, %v263_v7  ;;  %701 = vst [vmem:[%s1779_s6 + $0x1f0] sm:$0xff] %v554_v13  ;;  %v556_v25 = vadd.f32 %v1748_v2, %v407_v14  ;;  %v557_v26 = vadd.f32 %v1748_v2, %v408_v15  ;;  %v284_v10 = vld [vmem:[%s1743_s5 + $0x2d0] sm:$0xff]  ;;  %v285_v15 = vld [vmem:[%s1743_s5 + $0x2d8] sm:$0xff] }
  0x43   : > { %v558_v27 = vadd.f32 %v1748_v2, %v409_v16  ;;  %v413_v28 = vmul.f32 %v1745_v0, %v264_v12  ;;  %702 = vst [vmem:[%s1779_s6 + $0x1f8] sm:$0xff] %v555_v18  ;;  %v559_v32 = vadd.f32 %v1748_v2, %v410_v19  ;;  %v560_v33 = vadd.f32 %v1748_v2, %v411_v20  ;;  %v286_v16 = vld [vmem:[%s1743_s5 + $0x2e0] sm:$0xff] }
  0x44   : > { %v561_v34 = vadd.f32 %v1748_v2, %v412_v21  ;;  %v414_v35 = vmul.f32 %v1745_v0, %v265_v17  ;;  %703 = vst [vmem:[%s1779_s6 + $0x200] sm:$0xff] %v556_v25  ;;  %704 = vst [vmem:[%s1779_s6 + $0x208] sm:$0xff] %v557_v26  ;;  %v415_v38 = vmul.f32 %v1745_v0, %v266_v22  ;;  %v287_v17 = vld [vmem:[%s1743_s5 + $0x2e8] sm:$0xff]  ;;  %v288_v22 = vld [vmem:[%s1743_s5 + $0x2f0] sm:$0xff] }
  0x45   : > { %705 = vst [vmem:[%s1779_s6 + $0x210] sm:$0xff] %v558_v27  ;;  %v562_v37 = vadd.f32 %v1748_v2, %v413_v28  ;;  %v416_v39 = vmul.f32 %v1745_v0, %v267_v23  ;;  %v417_v40 = vmul.f32 %v1745_v0, %v268_v24  ;;  %706 = vst [vmem:[%s1779_s6 + $0x218] sm:$0xff] %v559_v32  ;;  %v289_v27 = vld [vmem:[%s1743_s5 + $0x2f8] sm:$0xff]  ;;  %v290_v32 = vld [vmem:[%s1743_s5 + $0x300] sm:$0xff] }
  0x46   : > { %707 = vst [vmem:[%s1779_s6 + $0x220] sm:$0xff] %v560_v33  ;;  %708 = vst [vmem:[%s1779_s6 + $0x228] sm:$0xff] %v561_v34  ;;  %v563_v42 = vadd.f32 %v1748_v2, %v414_v35  ;;  %v418_v43 = vmul.f32 %v1745_v0, %v269_v29  ;;  %v419_v44 = vmul.f32 %v1745_v0, %v270_v30  ;;  %v291_v33 = vld [vmem:[%s1743_s5 + $0x308] sm:$0xff]  ;;  %v292_v34 = vld [vmem:[%s1743_s5 + $0x310] sm:$0xff] }
  0x47   : > { %v420_v45 = vmul.f32 %v1745_v0, %v271_v31  ;;  %709 = vst [vmem:[%s1779_s6 + $0x230] sm:$0xff] %v562_v37  ;;  %v564_v49 = vadd.f32 %v1748_v2, %v415_v38  ;;  %v565_v50 = vadd.f32 %v1748_v2, %v416_v39  ;;  %v566_v51 = vadd.f32 %v1748_v2, %v417_v40  ;;  %v293_v39 = vld [vmem:[%s1743_s5 + $0x318] sm:$0xff]  ;;  %v294_v40 = vld [vmem:[%s1743_s5 + $0x320] sm:$0xff] }
  0x48   : > { %v421_v52 = vmul.f32 %v1745_v0, %v272_v36  ;;  %710 = vst [vmem:[%s1779_s6 + $0x238] sm:$0xff] %v563_v42  ;;  %v567_v56 = vadd.f32 %v1748_v2, %v418_v43  ;;  %v568_v57 = vadd.f32 %v1748_v2, %v419_v44  ;;  %v422_v59 = vmul.f32 %v1745_v0, %v273_v41  ;;  %v295_v41 = vld [vmem:[%s1743_s5 + $0x328] sm:$0xff] }
  0x49   : > { %v569_v58 = vadd.f32 %v1748_v2, %v420_v45  ;;  %711 = vst [vmem:[%s1779_s6 + $0x240] sm:$0xff] %v564_v49  ;;  %712 = vst [vmem:[%s1779_s6 + $0x248] sm:$0xff] %v565_v50  ;;  %v423_v62 = vmul.f32 %v1745_v0, %v274_v46  ;;  %v424_v63 = vmul.f32 %v1745_v0, %v275_v47  ;;  %v296_v46 = vld [vmem:[%s1743_s5 + $0x330] sm:$0xff] }
  0x4a   : > { %713 = vst [vmem:[%s1779_s6 + $0x250] sm:$0xff] %v566_v51  ;;  %v570_v61 = vadd.f32 %v1748_v2, %v421_v52  ;;  %v425_v1 = vmul.f32 %v1745_v0, %v276_v48  ;;  %714 = vst [vmem:[%s1779_s6 + $0x258] sm:$0xff] %v567_v56  ;;  %v571_v4 = vadd.f32 %v1748_v2, %v422_v59  ;;  %v297_v51 = vld [vmem:[%s1743_s5 + $0x338] sm:$0xff]  ;;  %v298_v56 = vld [vmem:[%s1743_s5 + $0x340] sm:$0xff] }
  0x4b   : > { %715 = vst [vmem:[%s1779_s6 + $0x260] sm:$0xff] %v568_v57  ;;  %716 = vst [vmem:[%s1779_s6 + $0x268] sm:$0xff] %v569_v58  ;;  %v426_v5 = vmul.f32 %v1745_v0, %v277_v53  ;;  %v427_v6 = vmul.f32 %v1745_v0, %v278_v54  ;;  %v428_v7 = vmul.f32 %v1745_v0, %v279_v55  ;;  %v299_v57 = vld [vmem:[%s1743_s5 + $0x348] sm:$0xff]  ;;  %v300_v58 = vld [vmem:[%s1743_s5 + $0x350] sm:$0xff] }
  0x4c   : > { %717 = vst [vmem:[%s1779_s6 + $0x270] sm:$0xff] %v570_v61  ;;  %v572_v11 = vadd.f32 %v1748_v2, %v423_v62  ;;  %v573_v12 = vadd.f32 %v1748_v2, %v424_v63  ;;  %v574_v13 = vadd.f32 %v1748_v2, %v425_v1  ;;  %v429_v14 = vmul.f32 %v1745_v0, %v280_v60  ;;  %v301_v63 = vld [vmem:[%s1743_s5 + $0x358] sm:$0xff]  ;;  %v302_v1 = vld [vmem:[%s1743_s5 + $0x360] sm:$0xff] }
  0x4d   : > { %718 = vst [vmem:[%s1779_s6 + $0x278] sm:$0xff] %v571_v4  ;;  %v575_v18 = vadd.f32 %v1748_v2, %v426_v5  ;;  %v576_v19 = vadd.f32 %v1748_v2, %v427_v6  ;;  %v577_v20 = vadd.f32 %v1748_v2, %v428_v7  ;;  %v430_v21 = vmul.f32 %v1745_v0, %v281_v3  ;;  %v303_v3 = vld [vmem:[%s1743_s5 + $0x368] sm:$0xff] }
  0x4e   : > { %719 = vst [vmem:[%s1779_s6 + $0x280] sm:$0xff] %v572_v11  ;;  %720 = vst [vmem:[%s1779_s6 + $0x288] sm:$0xff] %v573_v12  ;;  %v578_v23 = vadd.f32 %v1748_v2, %v429_v14  ;;  %v431_v24 = vmul.f32 %v1745_v0, %v282_v8  ;;  %v432_v25 = vmul.f32 %v1745_v0, %v283_v9  ;;  %v304_v8 = vld [vmem:[%s1743_s5 + $0x370] sm:$0xff] }
  0x4f   : > { %721 = vst [vmem:[%s1779_s6 + $0x290] sm:$0xff] %v574_v13  ;;  %v433_v26 = vmul.f32 %v1745_v0, %v284_v10  ;;  %722 = vst [vmem:[%s1779_s6 + $0x298] sm:$0xff] %v575_v18  ;;  %v579_v28 = vadd.f32 %v1748_v2, %v430_v21  ;;  %v434_v29 = vmul.f32 %v1745_v0, %v285_v15  ;;  %v305_v13 = vld [vmem:[%s1743_s5 + $0x378] sm:$0xff]  ;;  %v306_v18 = vld [vmem:[%s1743_s5 + $0x380] sm:$0xff] }
  0x50   : > { %723 = vst [vmem:[%s1779_s6 + $0x2a0] sm:$0xff] %v576_v19  ;;  %724 = vst [vmem:[%s1779_s6 + $0x2a8] sm:$0xff] %v577_v20  ;;  %v435_v30 = vmul.f32 %v1745_v0, %v286_v16  ;;  %v436_v31 = vmul.f32 %v1745_v0, %v287_v17  ;;  %v580_v35 = vadd.f32 %v1748_v2, %v431_v24  ;;  %v307_v19 = vld [vmem:[%s1743_s5 + $0x388] sm:$0xff]  ;;  %v308_v20 = vld [vmem:[%s1743_s5 + $0x390] sm:$0xff] }
  0x51   : > { %725 = vst [vmem:[%s1779_s6 + $0x2b0] sm:$0xff] %v578_v23  ;;  %v581_v36 = vadd.f32 %v1748_v2, %v432_v25  ;;  %v582_v37 = vadd.f32 %v1748_v2, %v433_v26  ;;  %v437_v38 = vmul.f32 %v1745_v0, %v288_v22  ;;  %726 = vst [vmem:[%s1779_s6 + $0x2b8] sm:$0xff] %v579_v28  ;;  %v309_v25 = vld [vmem:[%s1743_s5 + $0x398] sm:$0xff]  ;;  %v310_v26 = vld [vmem:[%s1743_s5 + $0x3a0] sm:$0xff] }
  0x52   : > { %v583_v42 = vadd.f32 %v1748_v2, %v434_v29  ;;  %v584_v43 = vadd.f32 %v1748_v2, %v435_v30  ;;  %v585_v44 = vadd.f32 %v1748_v2, %v436_v31  ;;  %v438_v45 = vmul.f32 %v1745_v0, %v289_v27  ;;  %727 = vst [vmem:[%s1779_s6 + $0x2c0] sm:$0xff] %v580_v35  ;;  %v311_v27 = vld [vmem:[%s1743_s5 + $0x3a8] sm:$0xff] }
  0x53   : > { %728 = vst [vmem:[%s1779_s6 + $0x2c8] sm:$0xff] %v581_v36  ;;  %729 = vst [vmem:[%s1779_s6 + $0x2d0] sm:$0xff] %v582_v37  ;;  %v586_v47 = vadd.f32 %v1748_v2, %v437_v38  ;;  %v439_v48 = vmul.f32 %v1745_v0, %v290_v32  ;;  %v440_v49 = vmul.f32 %v1745_v0, %v291_v33  ;;  %v312_v32 = vld [vmem:[%s1743_s5 + $0x3b0] sm:$0xff]  ;;  %v313_v37 = vld [vmem:[%s1743_s5 + $0x3b8] sm:$0xff] }
  0x54   : > { %v441_v50 = vmul.f32 %v1745_v0, %v292_v34  ;;  %730 = vst [vmem:[%s1779_s6 + $0x2d8] sm:$0xff] %v583_v42  ;;  %731 = vst [vmem:[%s1779_s6 + $0x2e0] sm:$0xff] %v584_v43  ;;  %v587_v52 = vadd.f32 %v1748_v2, %v438_v45  ;;  %v442_v53 = vmul.f32 %v1745_v0, %v293_v39  ;;  %v314_v42 = vld [vmem:[%s1743_s5 + $0x3c0] sm:$0xff]  ;;  %v315_v43 = vld [vmem:[%s1743_s5 + $0x3c8] sm:$0xff] }
  0x55   : > { %732 = vst [vmem:[%s1779_s6 + $0x2e8] sm:$0xff] %v585_v44  ;;  %v443_v54 = vmul.f32 %v1745_v0, %v294_v40  ;;  %v444_v55 = vmul.f32 %v1745_v0, %v295_v41  ;;  %733 = vst [vmem:[%s1779_s6 + $0x2f0] sm:$0xff] %v586_v47  ;;  %v588_v59 = vadd.f32 %v1748_v2, %v439_v48  ;;  %v316_v44 = vld [vmem:[%s1743_s5 + $0x3d0] sm:$0xff] }
  0x56   : > { %v589_v60 = vadd.f32 %v1748_v2, %v440_v49  ;;  %v590_v61 = vadd.f32 %v1748_v2, %v441_v50  ;;  %v445_v62 = vmul.f32 %v1745_v0, %v296_v46  ;;  %734 = vst [vmem:[%s1779_s6 + $0x2f8] sm:$0xff] %v587_v52  ;;  %v591_v4 = vadd.f32 %v1748_v2, %v442_v53  ;;  %v317_v49 = vld [vmem:[%s1743_s5 + $0x3d8] sm:$0xff]  ;;  %v318_v50 = vld [vmem:[%s1743_s5 + $0x3e0] sm:$0xff] }
  0x57   : > { %v592_v5 = vadd.f32 %v1748_v2, %v443_v54  ;;  %v593_v6 = vadd.f32 %v1748_v2, %v444_v55  ;;  %v446_v7 = vmul.f32 %v1745_v0, %v297_v51  ;;  %735 = vst [vmem:[%s1779_s6 + $0x300] sm:$0xff] %v588_v59  ;;  %v447_v10 = vmul.f32 %v1745_v0, %v298_v56  ;;  %v319_v51 = vld [vmem:[%s1743_s5 + $0x3e8] sm:$0xff]  ;;  %v320_v56 = vld [vmem:[%s1743_s5 + $0x3f0] sm:$0xff] }
  0x58   : > { %736 = vst [vmem:[%s1779_s6 + $0x308] sm:$0xff] %v589_v60  ;;  %737 = vst [vmem:[%s1779_s6 + $0x310] sm:$0xff] %v590_v61  ;;  %v594_v9 = vadd.f32 %v1748_v2, %v445_v62  ;;  %v448_v11 = vmul.f32 %v1745_v0, %v299_v57  ;;  %v449_v12 = vmul.f32 %v1745_v0, %v300_v58  ;;  %v321_v61 = vld [vmem:[%s1743_s5 + $0x3f8] sm:$0xff] }
  0x59   : > { %738 = vst [vmem:[%s1779_s6 + $0x318] sm:$0xff] %v591_v4  ;;  %739 = vst [vmem:[%s1779_s6 + $0x320] sm:$0xff] %v592_v5  ;;  %v595_v14 = vadd.f32 %v1748_v2, %v446_v7  ;;  %v450_v15 = vmul.f32 %v1745_v0, %v301_v63  ;;  %v451_v16 = vmul.f32 %v1745_v0, %v302_v1  ;;  %v322_v4 = vld [vmem:[%s1743_s5 + $0x400] sm:$0xff]  ;;  %v323_v5 = vld [vmem:[%s1743_s5 + $0x408] sm:$0xff] }
  0x5a   : > { %740 = vst [vmem:[%s1779_s6 + $0x328] sm:$0xff] %v593_v6  ;;  %v452_v17 = vmul.f32 %v1745_v0, %v303_v3  ;;  %741 = vst [vmem:[%s1779_s6 + $0x330] sm:$0xff] %v594_v9  ;;  %v596_v21 = vadd.f32 %v1748_v2, %v447_v10  ;;  %v597_v22 = vadd.f32 %v1748_v2, %v448_v11  ;;  %v324_v6 = vld [vmem:[%s1743_s5 + $0x410] sm:$0xff]  ;;  %v325_v11 = vld [vmem:[%s1743_s5 + $0x418] sm:$0xff] }
  0x5b   : > { %v598_v23 = vadd.f32 %v1748_v2, %v449_v12  ;;  %v453_v24 = vmul.f32 %v1745_v0, %v304_v8  ;;  %742 = vst [vmem:[%s1779_s6 + $0x338] sm:$0xff] %v595_v14  ;;  %v599_v28 = vadd.f32 %v1748_v2, %v450_v15  ;;  %v600_v29 = vadd.f32 %v1748_v2, %v451_v16  ;;  %v326_v12 = vld [vmem:[%s1743_s5 + $0x420] sm:$0xff] }
  0x5c   : > { %v601_v30 = vadd.f32 %v1748_v2, %v452_v17  ;;  %v454_v31 = vmul.f32 %v1745_v0, %v305_v13  ;;  %743 = vst [vmem:[%s1779_s6 + $0x340] sm:$0xff] %v596_v21  ;;  %744 = vst [vmem:[%s1779_s6 + $0x348] sm:$0xff] %v597_v22  ;;  %v455_v34 = vmul.f32 %v1745_v0, %v306_v18  ;;  %v327_v13 = vld [vmem:[%s1743_s5 + $0x428] sm:$0xff]  ;;  %v328_v18 = vld [vmem:[%s1743_s5 + $0x430] sm:$0xff] }
  0x5d   : > { %745 = vst [vmem:[%s1779_s6 + $0x350] sm:$0xff] %v598_v23  ;;  %v602_v33 = vadd.f32 %v1748_v2, %v453_v24  ;;  %v456_v35 = vmul.f32 %v1745_v0, %v307_v19  ;;  %v457_v36 = vmul.f32 %v1745_v0, %v308_v20  ;;  %746 = vst [vmem:[%s1779_s6 + $0x358] sm:$0xff] %v599_v28  ;;  %v329_v23 = vld [vmem:[%s1743_s5 + $0x438] sm:$0xff]  ;;  %v330_v28 = vld [vmem:[%s1743_s5 + $0x440] sm:$0xff] }
  0x5e   : > { %747 = vst [vmem:[%s1779_s6 + $0x360] sm:$0xff] %v600_v29  ;;  %748 = vst [vmem:[%s1779_s6 + $0x368] sm:$0xff] %v601_v30  ;;  %v603_v38 = vadd.f32 %v1748_v2, %v454_v31  ;;  %v458_v39 = vmul.f32 %v1745_v0, %v309_v25  ;;  %v459_v40 = vmul.f32 %v1745_v0, %v310_v26  ;;  %v331_v29 = vld [vmem:[%s1743_s5 + $0x448] sm:$0xff]  ;;  %v332_v30 = vld [vmem:[%s1743_s5 + $0x450] sm:$0xff] }
  0x5f   : > { %v460_v41 = vmul.f32 %v1745_v0, %v311_v27  ;;  %749 = vst [vmem:[%s1779_s6 + $0x370] sm:$0xff] %v602_v33  ;;  %v604_v45 = vadd.f32 %v1748_v2, %v455_v34  ;;  %v605_v46 = vadd.f32 %v1748_v2, %v456_v35  ;;  %v606_v47 = vadd.f32 %v1748_v2, %v457_v36  ;;  %v333_v35 = vld [vmem:[%s1743_s5 + $0x458] sm:$0xff]  ;;  %v334_v36 = vld [vmem:[%s1743_s5 + $0x460] sm:$0xff] }
  0x60   : > { %v461_v48 = vmul.f32 %v1745_v0, %v312_v32  ;;  %750 = vst [vmem:[%s1779_s6 + $0x378] sm:$0xff] %v603_v38  ;;  %v607_v52 = vadd.f32 %v1748_v2, %v458_v39  ;;  %v608_v53 = vadd.f32 %v1748_v2, %v459_v40  ;;  %v462_v55 = vmul.f32 %v1745_v0, %v313_v37  ;;  %v335_v37 = vld [vmem:[%s1743_s5 + $0x468] sm:$0xff] }
  0x61   : > { %v609_v54 = vadd.f32 %v1748_v2, %v460_v41  ;;  %751 = vst [vmem:[%s1779_s6 + $0x380] sm:$0xff] %v604_v45  ;;  %752 = vst [vmem:[%s1779_s6 + $0x388] sm:$0xff] %v605_v46  ;;  %v463_v58 = vmul.f32 %v1745_v0, %v314_v42  ;;  %v464_v59 = vmul.f32 %v1745_v0, %v315_v43  ;;  %v336_v42 = vld [vmem:[%s1743_s5 + $0x470] sm:$0xff] }
  0x62   : > { %753 = vst [vmem:[%s1779_s6 + $0x390] sm:$0xff] %v606_v47  ;;  %v610_v57 = vadd.f32 %v1748_v2, %v461_v48  ;;  %v465_v60 = vmul.f32 %v1745_v0, %v316_v44  ;;  %754 = vst [vmem:[%s1779_s6 + $0x398] sm:$0xff] %v607_v52  ;;  %v611_v62 = vadd.f32 %v1748_v2, %v462_v55  ;;  %v337_v47 = vld [vmem:[%s1743_s5 + $0x478] sm:$0xff]  ;;  %v338_v52 = vld [vmem:[%s1743_s5 + $0x480] sm:$0xff] }
  0x63   : > { %755 = vst [vmem:[%s1779_s6 + $0x3a0] sm:$0xff] %v608_v53  ;;  %756 = vst [vmem:[%s1779_s6 + $0x3a8] sm:$0xff] %v609_v54  ;;  %v466_v63 = vmul.f32 %v1745_v0, %v317_v49  ;;  %v467_v1 = vmul.f32 %v1745_v0, %v318_v50  ;;  %v468_v3 = vmul.f32 %v1745_v0, %v319_v51  ;;  %v339_v53 = vld [vmem:[%s1743_s5 + $0x488] sm:$0xff]  ;;  %v340_v54 = vld [vmem:[%s1743_s5 + $0x490] sm:$0xff] }
  0x64   : > { %757 = vst [vmem:[%s1779_s6 + $0x3b0] sm:$0xff] %v610_v57  ;;  %v612_v7 = vadd.f32 %v1748_v2, %v463_v58  ;;  %v613_v8 = vadd.f32 %v1748_v2, %v464_v59  ;;  %v614_v9 = vadd.f32 %v1748_v2, %v465_v60  ;;  %v469_v10 = vmul.f32 %v1745_v0, %v320_v56 }
  0x65   : > { %758 = vst [vmem:[%s1779_s6 + $0x3b8] sm:$0xff] %v611_v62  ;;  %v615_v14 = vadd.f32 %v1748_v2, %v466_v63  ;;  %v616_v15 = vadd.f32 %v1748_v2, %v467_v1  ;;  %v617_v16 = vadd.f32 %v1748_v2, %v468_v3  ;;  %v470_v17 = vmul.f32 %v1745_v0, %v321_v61 }
  0x66   : > { %759 = vst [vmem:[%s1779_s6 + $0x3c0] sm:$0xff] %v612_v7  ;;  %760 = vst [vmem:[%s1779_s6 + $0x3c8] sm:$0xff] %v613_v8  ;;  %v618_v19 = vadd.f32 %v1748_v2, %v469_v10  ;;  %v471_v20 = vmul.f32 %v1745_v0, %v322_v4  ;;  %v472_v21 = vmul.f32 %v1745_v0, %v323_v5 }
  0x67   : > { %761 = vst [vmem:[%s1779_s6 + $0x3d0] sm:$0xff] %v614_v9  ;;  %v473_v22 = vmul.f32 %v1745_v0, %v324_v6  ;;  %762 = vst [vmem:[%s1779_s6 + $0x3d8] sm:$0xff] %v615_v14  ;;  %v619_v24 = vadd.f32 %v1748_v2, %v470_v17  ;;  %v474_v25 = vmul.f32 %v1745_v0, %v325_v11 }
  0x68   : > { %763 = vst [vmem:[%s1779_s6 + $0x3e0] sm:$0xff] %v616_v15  ;;  %764 = vst [vmem:[%s1779_s6 + $0x3e8] sm:$0xff] %v617_v16  ;;  %v475_v26 = vmul.f32 %v1745_v0, %v326_v12  ;;  %v476_v27 = vmul.f32 %v1745_v0, %v327_v13  ;;  %v620_v31 = vadd.f32 %v1748_v2, %v471_v20 }
  0x69   : > { %765 = vst [vmem:[%s1779_s6 + $0x3f0] sm:$0xff] %v618_v19  ;;  %v621_v32 = vadd.f32 %v1748_v2, %v472_v21  ;;  %v622_v33 = vadd.f32 %v1748_v2, %v473_v22  ;;  %v477_v34 = vmul.f32 %v1745_v0, %v328_v18  ;;  %766 = vst [vmem:[%s1779_s6 + $0x3f8] sm:$0xff] %v619_v24 }
  0x6a   : > { %v623_v38 = vadd.f32 %v1748_v2, %v474_v25  ;;  %v624_v39 = vadd.f32 %v1748_v2, %v475_v26  ;;  %v625_v40 = vadd.f32 %v1748_v2, %v476_v27  ;;  %v478_v41 = vmul.f32 %v1745_v0, %v329_v23  ;;  %767 = vst [vmem:[%s1779_s6 + $0x400] sm:$0xff] %v620_v31 }
  0x6b   : > { %768 = vst [vmem:[%s1779_s6 + $0x408] sm:$0xff] %v621_v32  ;;  %769 = vst [vmem:[%s1779_s6 + $0x410] sm:$0xff] %v622_v33  ;;  %v626_v43 = vadd.f32 %v1748_v2, %v477_v34  ;;  %v479_v44 = vmul.f32 %v1745_v0, %v330_v28  ;;  %v480_v45 = vmul.f32 %v1745_v0, %v331_v29 }
  0x6c   : > { %v481_v46 = vmul.f32 %v1745_v0, %v332_v30  ;;  %770 = vst [vmem:[%s1779_s6 + $0x418] sm:$0xff] %v623_v38  ;;  %771 = vst [vmem:[%s1779_s6 + $0x420] sm:$0xff] %v624_v39  ;;  %v627_v48 = vadd.f32 %v1748_v2, %v478_v41  ;;  %v482_v49 = vmul.f32 %v1745_v0, %v333_v35 }
  0x6d   : > { %772 = vst [vmem:[%s1779_s6 + $0x428] sm:$0xff] %v625_v40  ;;  %v483_v50 = vmul.f32 %v1745_v0, %v334_v36  ;;  %v484_v51 = vmul.f32 %v1745_v0, %v335_v37  ;;  %773 = vst [vmem:[%s1779_s6 + $0x430] sm:$0xff] %v626_v43  ;;  %v628_v55 = vadd.f32 %v1748_v2, %v479_v44 }
  0x6e   : > { %v629_v56 = vadd.f32 %v1748_v2, %v480_v45  ;;  %v630_v57 = vadd.f32 %v1748_v2, %v481_v46  ;;  %v485_v58 = vmul.f32 %v1745_v0, %v336_v42  ;;  %774 = vst [vmem:[%s1779_s6 + $0x438] sm:$0xff] %v627_v48  ;;  %v631_v59 = vadd.f32 %v1748_v2, %v482_v49  ;;  %792 = sbr.rel (!%p1729_p4) target bundleno = 282 (0x11a), region = 36 }
  0x6f   : > { %v632_v60 = vadd.f32 %v1748_v2, %v483_v50  ;;  %v633_v61 = vadd.f32 %v1748_v2, %v484_v51  ;;  %v486_v62 = vmul.f32 %v1745_v0, %v337_v47  ;;  %775 = vst [vmem:[%s1779_s6 + $0x440] sm:$0xff] %v628_v55  ;;  %v487_v1 = vmul.f32 %v1745_v0, %v338_v52 }
  0x70   : > { %776 = vst [vmem:[%s1779_s6 + $0x448] sm:$0xff] %v629_v56  ;;  %777 = vst [vmem:[%s1779_s6 + $0x450] sm:$0xff] %v630_v57  ;;  %v634_v63 = vadd.f32 %v1748_v2, %v485_v58  ;;  %v488_v3 = vmul.f32 %v1745_v0, %v339_v53  ;;  %v489_v4 = vmul.f32 %v1745_v0, %v340_v54 }
  0x71   : > { %778 = vst [vmem:[%s1779_s6 + $0x458] sm:$0xff] %v631_v59  ;;  %779 = vst [vmem:[%s1779_s6 + $0x460] sm:$0xff] %v632_v60  ;;  %v635_v5 = vadd.f32 %v1748_v2, %v486_v62  ;;  %v636_v6 = vadd.f32 %v1748_v2, %v487_v1 }
  0x72   : > { %780 = vst [vmem:[%s1779_s6 + $0x468] sm:$0xff] %v633_v61  ;;  %781 = vst [vmem:[%s1779_s6 + $0x470] sm:$0xff] %v634_v63  ;;  %v637_v7 = vadd.f32 %v1748_v2, %v488_v3  ;;  %v638_v8 = vadd.f32 %v1748_v2, %v489_v4 }
  0x73   : > { %782 = vst [vmem:[%s1779_s6 + $0x478] sm:$0xff] %v635_v5  ;;  %783 = vst [vmem:[%s1779_s6 + $0x480] sm:$0xff] %v636_v6 }
  0x74   : > { %784 = vst [vmem:[%s1779_s6 + $0x488] sm:$0xff] %v637_v7  ;;  %785 = vst [vmem:[%s1779_s6 + $0x490] sm:$0xff] %v638_v8 }
  0x75   : > { %s2781_s7 = smov (!%p795_p8, %s794_s7), 147 }
  0x76   : > { %s1340_s12 = sshll.u32 %s2781_s7, 7  ;;  %s2349_s13 = sshll.u32 %s2781_s7, 3 }
  0x77   : > { %p1344_p9 = scmp.eq.s32.totalorder %s1340_s12, 0 }
  0x78   : > { %p805_p10 = scmp.lt.u32.totalorder (!%p1344_p9), %s2349_s13, 8 }
  0x79   : > { %804 = sbr.rel (%p1344_p9) target bundleno = 282 (0x11a), region = 40 }
  0x80   : > { %808 = sbr.rel (%p805_p10) target bundleno = 273 (0x111), region = 44  ;;  %s2353_s14 = sand.u32 (!%p805_p10), 7, %s2349_s13  }
  0x81   : > { %p824_p11 = scmp.eq.s32.totalorder (!%p805_p10), %s2353_s14, 0  ;;  %p1345_p12 = scmp.ne.s32.totalorder (!%p805_p10), %s2353_s14, 0 }
  0x87   : > { %827 = sbr.rel (%p1345_p12) target bundleno = 202 (0xca), region = 59  ;;  %s828_s15 = sshrl.u32 (!%p1345_p12), %s2349_s13, 3 }
  0x88   : > { %s2360_s16 = sshrl.u32 (!%p1345_p12), %s828_s15, 6 }
  0x89   : > { %p1346_p13 = scmp.le.s32.totalorder (!%p1345_p12), %s2360_s16, 0 }
  0x8e   : > { %1263 = sbr.rel (%p1346_p13) target bundleno = 182 (0xb6), region = 140  ;;  %s2767_s18 = smov (!%p1346_p13), %s2347_s11 }
  0x8f   : > { %s2768_s1 = smov (!%p1346_p13), %s1779_s6  ;;  %s2369_s19 = smov (!%p1346_p13), 0  }
  0x90   : > { %s2371_s20 = smov (!%p1346_p13), 0  }
  0x95 LB: >> { %v841_v0 = vld [vmem:[%s1621_s1] sm:$0xff]  ;;  %v843_v2 = vld [vmem:[%s1621_s1 + $0x8] sm:$0xff]  ;;  %v845_v9 = vld [vmem:[%s1621_s1 + $0x10] sm:$0xff]  ;;  %s969_s22 = sadd.s32 1, %s1625_s19  ;;  %s835_s20 = sadd.s32 1, %s1629_s20   ;;  %s1629_s20 = sphi %s2371_s20, %s835_s20   ;;  %s1625_s19 = sphi %s2369_s19, %s2771_s19   ;;  %s1621_s1 = sphi %s2768_s1, %s2770_s1   ;;  %s1617_s18 = sphi %s2767_s18, %s2769_s18  }
  0x96   : >> { %842 = vst [vmem:[%s1617_s18] sm:$0xff] %v841_v0  ;;  %844 = vst [vmem:[%s1617_s18 + $0x8] sm:$0xff] %v843_v2  ;;  %v847_v10 = vld [vmem:[%s1621_s1 + $0x18] sm:$0xff]  ;;  %v849_v11 = vld [vmem:[%s1621_s1 + $0x20] sm:$0xff]  ;;  %p970_p0 = scmp.ge.s32.totalorder %s969_s22, %s2360_s16  ;;  %p834_p1 = scmp.ge.s32.totalorder %s835_s20, %s2360_s16 }
  0x97   : >> { %846 = vst [vmem:[%s1617_s18 + $0x10] sm:$0xff] %v845_v9  ;;  %v851_v12 = vld [vmem:[%s1621_s1 + $0x28] sm:$0xff]  ;;  %848 = vst [vmem:[%s1617_s18 + $0x18] sm:$0xff] %v847_v10  ;;  %v853_v13 = vld [vmem:[%s1621_s1 + $0x30] sm:$0xff] }
  0x98   : >> { %850 = vst [vmem:[%s1617_s18 + $0x20] sm:$0xff] %v849_v11  ;;  %852 = vst [vmem:[%s1617_s18 + $0x28] sm:$0xff] %v851_v12  ;;  %v855_v14 = vld [vmem:[%s1621_s1 + $0x38] sm:$0xff]  ;;  %v857_v15 = vld [vmem:[%s1621_s1 + $0x40] sm:$0xff]  ;;  %s2783_s22 = smov (%p970_p0, %s969_s22), 0 }
  0x99   : >> { %854 = vst [vmem:[%s1617_s18 + $0x30] sm:$0xff] %v853_v13  ;;  %856 = vst [vmem:[%s1617_s18 + $0x38] sm:$0xff] %v855_v14  ;;  %v859_v16 = vld [vmem:[%s1621_s1 + $0x48] sm:$0xff]  ;;  %v861_v17 = vld [vmem:[%s1621_s1 + $0x50] sm:$0xff]  ;;  %s1347_s23 = sshll.u32 %s2783_s22, 9  ;;  %s2771_s19 = smov %s2783_s22 }
  0x9a   : >> { %858 = vst [vmem:[%s1617_s18 + $0x40] sm:$0xff] %v857_v15  ;;  %v863_v18 = vld [vmem:[%s1621_s1 + $0x58] sm:$0xff]  ;;  %860 = vst [vmem:[%s1617_s18 + $0x48] sm:$0xff] %v859_v16  ;;  %v865_v19 = vld [vmem:[%s1621_s1 + $0x60] sm:$0xff]  ;;  %s2427_s24 = scalar_lea.vmem %s1779_s6, %s1347_s23 [#allocation4]   ;;  %s2430_s25 = scalar_lea.vmem %s2347_s11, %s1347_s23  }
  0x9b   : >> { %862 = vst [vmem:[%s1617_s18 + $0x50] sm:$0xff] %v861_v17  ;;  %864 = vst [vmem:[%s1617_s18 + $0x58] sm:$0xff] %v863_v18  ;;  %v867_v20 = vld [vmem:[%s1621_s1 + $0x68] sm:$0xff]  ;;  %v869_v21 = vld [vmem:[%s1621_s1 + $0x70] sm:$0xff] }
  0x9c   : >> { %866 = vst [vmem:[%s1617_s18 + $0x60] sm:$0xff] %v865_v19  ;;  %868 = vst [vmem:[%s1617_s18 + $0x68] sm:$0xff] %v867_v20  ;;  %v871_v22 = vld [vmem:[%s1621_s1 + $0x78] sm:$0xff]  ;;  %v873_v23 = vld [vmem:[%s1621_s1 + $0x80] sm:$0xff] }
  0x9d   : >> { %870 = vst [vmem:[%s1617_s18 + $0x70] sm:$0xff] %v869_v21  ;;  %v875_v24 = vld [vmem:[%s1621_s1 + $0x88] sm:$0xff]  ;;  %872 = vst [vmem:[%s1617_s18 + $0x78] sm:$0xff] %v871_v22  ;;  %v877_v25 = vld [vmem:[%s1621_s1 + $0x90] sm:$0xff] }
  0x9e   : >> { %874 = vst [vmem:[%s1617_s18 + $0x80] sm:$0xff] %v873_v23  ;;  %876 = vst [vmem:[%s1617_s18 + $0x88] sm:$0xff] %v875_v24  ;;  %v879_v26 = vld [vmem:[%s1621_s1 + $0x98] sm:$0xff]  ;;  %v881_v27 = vld [vmem:[%s1621_s1 + $0xa0] sm:$0xff] }
  0x9f   : >> { %878 = vst [vmem:[%s1617_s18 + $0x90] sm:$0xff] %v877_v25  ;;  %880 = vst [vmem:[%s1617_s18 + $0x98] sm:$0xff] %v879_v26  ;;  %v883_v28 = vld [vmem:[%s1621_s1 + $0xa8] sm:$0xff]  ;;  %v885_v29 = vld [vmem:[%s1621_s1 + $0xb0] sm:$0xff] }
  0xa0   : >> { %882 = vst [vmem:[%s1617_s18 + $0xa0] sm:$0xff] %v881_v27  ;;  %v887_v30 = vld [vmem:[%s1621_s1 + $0xb8] sm:$0xff]  ;;  %884 = vst [vmem:[%s1617_s18 + $0xa8] sm:$0xff] %v883_v28  ;;  %v889_v31 = vld [vmem:[%s1621_s1 + $0xc0] sm:$0xff] }
  0xa1   : >> { %886 = vst [vmem:[%s1617_s18 + $0xb0] sm:$0xff] %v885_v29  ;;  %888 = vst [vmem:[%s1617_s18 + $0xb8] sm:$0xff] %v887_v30  ;;  %v891_v32 = vld [vmem:[%s1621_s1 + $0xc8] sm:$0xff]  ;;  %v893_v33 = vld [vmem:[%s1621_s1 + $0xd0] sm:$0xff] }
  0xa2   : >> { %890 = vst [vmem:[%s1617_s18 + $0xc0] sm:$0xff] %v889_v31  ;;  %892 = vst [vmem:[%s1617_s18 + $0xc8] sm:$0xff] %v891_v32  ;;  %v895_v34 = vld [vmem:[%s1621_s1 + $0xd8] sm:$0xff]  ;;  %v897_v35 = vld [vmem:[%s1621_s1 + $0xe0] sm:$0xff] }
  0xa3   : >> { %894 = vst [vmem:[%s1617_s18 + $0xd0] sm:$0xff] %v893_v33  ;;  %v899_v36 = vld [vmem:[%s1621_s1 + $0xe8] sm:$0xff]  ;;  %896 = vst [vmem:[%s1617_s18 + $0xd8] sm:$0xff] %v895_v34  ;;  %v901_v37 = vld [vmem:[%s1621_s1 + $0xf0] sm:$0xff] }
  0xa4   : >> { %898 = vst [vmem:[%s1617_s18 + $0xe0] sm:$0xff] %v897_v35  ;;  %900 = vst [vmem:[%s1617_s18 + $0xe8] sm:$0xff] %v899_v36  ;;  %v903_v38 = vld [vmem:[%s1621_s1 + $0xf8] sm:$0xff]  ;;  %v905_v39 = vld [vmem:[%s1621_s1 + $0x100] sm:$0xff] }
  0xa5   : >> { %902 = vst [vmem:[%s1617_s18 + $0xf0] sm:$0xff] %v901_v37  ;;  %904 = vst [vmem:[%s1617_s18 + $0xf8] sm:$0xff] %v903_v38  ;;  %v907_v40 = vld [vmem:[%s1621_s1 + $0x108] sm:$0xff]  ;;  %v909_v41 = vld [vmem:[%s1621_s1 + $0x110] sm:$0xff] }
  0xa6   : >> { %906 = vst [vmem:[%s1617_s18 + $0x100] sm:$0xff] %v905_v39  ;;  %v911_v42 = vld [vmem:[%s1621_s1 + $0x118] sm:$0xff]  ;;  %908 = vst [vmem:[%s1617_s18 + $0x108] sm:$0xff] %v907_v40  ;;  %v913_v43 = vld [vmem:[%s1621_s1 + $0x120] sm:$0xff] }
  0xa7   : >> { %910 = vst [vmem:[%s1617_s18 + $0x110] sm:$0xff] %v909_v41  ;;  %912 = vst [vmem:[%s1617_s18 + $0x118] sm:$0xff] %v911_v42  ;;  %v915_v44 = vld [vmem:[%s1621_s1 + $0x128] sm:$0xff]  ;;  %v917_v45 = vld [vmem:[%s1621_s1 + $0x130] sm:$0xff] }
  0xa8   : >> { %914 = vst [vmem:[%s1617_s18 + $0x120] sm:$0xff] %v913_v43  ;;  %916 = vst [vmem:[%s1617_s18 + $0x128] sm:$0xff] %v915_v44  ;;  %v919_v46 = vld [vmem:[%s1621_s1 + $0x138] sm:$0xff]  ;;  %v921_v47 = vld [vmem:[%s1621_s1 + $0x140] sm:$0xff] }
  0xa9   : >> { %918 = vst [vmem:[%s1617_s18 + $0x130] sm:$0xff] %v917_v45  ;;  %v923_v48 = vld [vmem:[%s1621_s1 + $0x148] sm:$0xff]  ;;  %920 = vst [vmem:[%s1617_s18 + $0x138] sm:$0xff] %v919_v46  ;;  %v925_v49 = vld [vmem:[%s1621_s1 + $0x150] sm:$0xff] }
  0xaa   : >> { %922 = vst [vmem:[%s1617_s18 + $0x140] sm:$0xff] %v921_v47  ;;  %924 = vst [vmem:[%s1617_s18 + $0x148] sm:$0xff] %v923_v48  ;;  %v927_v50 = vld [vmem:[%s1621_s1 + $0x158] sm:$0xff]  ;;  %v929_v51 = vld [vmem:[%s1621_s1 + $0x160] sm:$0xff] }
  0xab   : >> { %926 = vst [vmem:[%s1617_s18 + $0x150] sm:$0xff] %v925_v49  ;;  %928 = vst [vmem:[%s1617_s18 + $0x158] sm:$0xff] %v927_v50  ;;  %v931_v52 = vld [vmem:[%s1621_s1 + $0x168] sm:$0xff]  ;;  %v933_v53 = vld [vmem:[%s1621_s1 + $0x170] sm:$0xff] }
  0xac   : >> { %930 = vst [vmem:[%s1617_s18 + $0x160] sm:$0xff] %v929_v51  ;;  %v935_v54 = vld [vmem:[%s1621_s1 + $0x178] sm:$0xff]  ;;  %932 = vst [vmem:[%s1617_s18 + $0x168] sm:$0xff] %v931_v52  ;;  %v937_v55 = vld [vmem:[%s1621_s1 + $0x180] sm:$0xff] }
  0xad   : >> { %934 = vst [vmem:[%s1617_s18 + $0x170] sm:$0xff] %v933_v53  ;;  %936 = vst [vmem:[%s1617_s18 + $0x178] sm:$0xff] %v935_v54  ;;  %v939_v56 = vld [vmem:[%s1621_s1 + $0x188] sm:$0xff]  ;;  %v941_v57 = vld [vmem:[%s1621_s1 + $0x190] sm:$0xff] }
  0xae   : >> { %938 = vst [vmem:[%s1617_s18 + $0x180] sm:$0xff] %v937_v55  ;;  %940 = vst [vmem:[%s1617_s18 + $0x188] sm:$0xff] %v939_v56  ;;  %v943_v58 = vld [vmem:[%s1621_s1 + $0x198] sm:$0xff]  ;;  %v945_v59 = vld [vmem:[%s1621_s1 + $0x1a0] sm:$0xff] }
  0xaf   : >> { %942 = vst [vmem:[%s1617_s18 + $0x190] sm:$0xff] %v941_v57  ;;  %v947_v60 = vld [vmem:[%s1621_s1 + $0x1a8] sm:$0xff]  ;;  %944 = vst [vmem:[%s1617_s18 + $0x198] sm:$0xff] %v943_v58  ;;  %v949_v61 = vld [vmem:[%s1621_s1 + $0x1b0] sm:$0xff]  ;;  %837 = sbr.rel (!%p834_p1) target bundleno = 149 (0x95), region = 146 }
  0xb0   : >> { %946 = vst [vmem:[%s1617_s18 + $0x1a0] sm:$0xff] %v945_v59  ;;  %948 = vst [vmem:[%s1617_s18 + $0x1a8] sm:$0xff] %v947_v60  ;;  %v951_v62 = vld [vmem:[%s1621_s1 + $0x1b8] sm:$0xff]  ;;  %v953_v63 = vld [vmem:[%s1621_s1 + $0x1c0] sm:$0xff] }
  0xb1   : >> { %950 = vst [vmem:[%s1617_s18 + $0x1b0] sm:$0xff] %v949_v61  ;;  %952 = vst [vmem:[%s1617_s18 + $0x1b8] sm:$0xff] %v951_v62  ;;  %v955_v1 = vld [vmem:[%s1621_s1 + $0x1c8] sm:$0xff]  ;;  %v957_v3 = vld [vmem:[%s1621_s1 + $0x1d0] sm:$0xff] }
  0xb2   : >> { %954 = vst [vmem:[%s1617_s18 + $0x1c0] sm:$0xff] %v953_v63  ;;  %v959_v4 = vld [vmem:[%s1621_s1 + $0x1d8] sm:$0xff]  ;;  %956 = vst [vmem:[%s1617_s18 + $0x1c8] sm:$0xff] %v955_v1  ;;  %v961_v5 = vld [vmem:[%s1621_s1 + $0x1e0] sm:$0xff] }
  0xb3   : >> { %958 = vst [vmem:[%s1617_s18 + $0x1d0] sm:$0xff] %v957_v3  ;;  %960 = vst [vmem:[%s1617_s18 + $0x1d8] sm:$0xff] %v959_v4  ;;  %v963_v6 = vld [vmem:[%s1621_s1 + $0x1e8] sm:$0xff]  ;;  %v965_v7 = vld [vmem:[%s1621_s1 + $0x1f0] sm:$0xff] }
  0xb4   : >> { %962 = vst [vmem:[%s1617_s18 + $0x1e0] sm:$0xff] %v961_v5  ;;  %964 = vst [vmem:[%s1617_s18 + $0x1e8] sm:$0xff] %v963_v6  ;;  %v967_v8 = vld [vmem:[%s1621_s1 + $0x1f8] sm:$0xff]  ;;  %s2770_s1 = smov %s2427_s24 }
  0xb5   : >> { %966 = vst [vmem:[%s1617_s18 + $0x1f0] sm:$0xff] %v965_v7  ;;  %968 = vst [vmem:[%s1617_s18 + $0x1f8] sm:$0xff] %v967_v8  ;;  %s2769_s18 = smov %s2430_s25 }
  0xb6 PF: > { %s2536_s26 = sand.u32 63, %s828_s15   ;;  %s1368_s27 = sshll.u32 %s2360_s16, 13 }
  0xb7   : > { %s980_s28 = sshra.s32 %s1368_s27, 4  ;;  %p1352_p2 = scmp.le.s32.totalorder %s2536_s26, 0 }
  0xb8   : > { %s981_s29 = scalar_lea.vmem %s1779_s6, %s980_s28 [#allocation4]   ;;  %s984_s30 = scalar_lea.vmem %s2347_s11, %s980_s28  }
  0xb9   : > { %1277 = sbr.rel (%p1352_p2) target bundleno = 202 (0xca), region = 151  ;;  %s1631_s4 = smov (!%p1352_p2), %s984_s30  }
  0xba   : > { %s1635_s5 = smov (!%p1352_p2), %s981_s29   ;;  %s1639_s7 = smov (!%p1352_p2), 0  }
  0xbb   : > { %s1643_s8 = smov (!%p1352_p2), 0  }
  0xc0 LB: >> { %v996_v0 = vld [vmem:[%s1637_s5] sm:$0xff]  ;;  %s998_s9 = sadd.s32 1, %s1641_s7  ;;  %s990_s8 = sadd.s32 1, %s1645_s8   ;;  %s1645_s8 = sphi %s1643_s8, %s990_s8   ;;  %s1641_s7 = sphi %s1639_s7, %s1640_s7   ;;  %s1637_s5 = sphi %s1635_s5, %s1003_s5   ;;  %s1633_s4 = sphi %s1631_s4, %s1004_s4  }
  0xc1   : >> { %997 = vst [vmem:[%s1633_s4] sm:$0xff] %v996_v0  ;;  %p999_p3 = scmp.ge.s32.totalorder %s998_s9, %s2536_s26  ;;  %p989_p4 = scmp.ge.s32.totalorder %s990_s8, %s2536_s26 }
  0xc3   : >> { %s2785_s9 = smov (%p999_p3, %s998_s9), 0  ;;  %992 = sbr.rel (!%p989_p4) target bundleno = 192 (0xc0), region = 157 }
  0xc4   : >> { %s1353_s10 = sshll.u32 %s2785_s9, 3  ;;  %s1640_s7 = smov %s2785_s9  }
  0xc5   : >> { %s1003_s5 = scalar_lea.vmem %s981_s29, %s1353_s10 [#allocation4]   ;;  %s1004_s4 = scalar_lea.vmem %s984_s30, %s1353_s10  }
  0xca PF: > { %1007 = sbr.rel (%p824_p11) target bundleno = 273 (0x111), region = 77  ;;  %s2548_s12 = ssub.s32 (!%p824_p11), %s2349_s13, %s2353_s14 }
  0xcb   : > { %s1013_s15 = sshrl.u32 (!%p824_p11), %s2349_s13, 3  ;;  %s1010_s16 = scalar_lea.vmem (!%p824_p11), %s1779_s6, %s2548_s12 [#allocation4] }
  0xcc   : > { %s1012_s18 = scalar_lea.vmem (!%p824_p11), %s2347_s11, %s2548_s12  ;;  %s2557_s1 = sshrl.u32 (!%p824_p11), %s1013_s15, 6 }
  0xcd   : > { %p1355_p5 = scmp.le.s32.totalorder (!%p824_p11), %s2557_s1, 0 }
  0xd1   : > { %1291 = sbr.rel (%p1355_p5) target bundleno = 249 (0xf9), region = 162  ;;  %s2772_s19 = smov (!%p1355_p5), %s2347_s11 }
  0xd2   : > { %s2773_s20 = smov (!%p1355_p5), %s1779_s6  ;;  %s2566_s22 = smov (!%p1355_p5), 0  }
  0xd3   : > { %s2568_s23 = smov (!%p1355_p5), 0  }
  0xd8 LB: >> { %v1026_v2 = vld [vmem:[%s1653_s20] sm:$0xff]  ;;  %v1028_v9 = vld [vmem:[%s1653_s20 + $0x8] sm:$0xff]  ;;  %v1030_v10 = vld [vmem:[%s1653_s20 + $0x10] sm:$0xff]  ;;  %s1154_s24 = sadd.s32 1, %s1657_s22  ;;  %s1020_s23 = sadd.s32 1, %s1661_s23   ;;  %s1661_s23 = sphi %s2568_s23, %s1020_s23   ;;  %s1657_s22 = sphi %s2566_s22, %s2776_s22   ;;  %s1653_s20 = sphi %s2773_s20, %s2775_s20   ;;  %s1649_s19 = sphi %s2772_s19, %s2774_s19  }
  0xd9   : >> { %1027 = vst [vmem:[%s1649_s19] sm:$0xff] %v1026_v2  ;;  %1029 = vst [vmem:[%s1649_s19 + $0x8] sm:$0xff] %v1028_v9  ;;  %v1032_v11 = vld [vmem:[%s1653_s20 + $0x18] sm:$0xff]  ;;  %v1034_v12 = vld [vmem:[%s1653_s20 + $0x20] sm:$0xff]  ;;  %p1155_p6 = scmp.ge.s32.totalorder %s1154_s24, %s2557_s1  ;;  %p1019_p7 = scmp.ge.s32.totalorder %s1020_s23, %s2557_s1 }
  0xda   : >> { %1031 = vst [vmem:[%s1649_s19 + $0x10] sm:$0xff] %v1030_v10  ;;  %v1036_v13 = vld [vmem:[%s1653_s20 + $0x28] sm:$0xff]  ;;  %1033 = vst [vmem:[%s1649_s19 + $0x18] sm:$0xff] %v1032_v11  ;;  %v1038_v14 = vld [vmem:[%s1653_s20 + $0x30] sm:$0xff] }
  0xdb   : >> { %1035 = vst [vmem:[%s1649_s19 + $0x20] sm:$0xff] %v1034_v12  ;;  %1037 = vst [vmem:[%s1649_s19 + $0x28] sm:$0xff] %v1036_v13  ;;  %v1040_v15 = vld [vmem:[%s1653_s20 + $0x38] sm:$0xff]  ;;  %v1042_v16 = vld [vmem:[%s1653_s20 + $0x40] sm:$0xff]  ;;  %s2787_s24 = smov (%p1155_p6, %s1154_s24), 0 }
  0xdc   : >> { %1039 = vst [vmem:[%s1649_s19 + $0x30] sm:$0xff] %v1038_v14  ;;  %1041 = vst [vmem:[%s1649_s19 + $0x38] sm:$0xff] %v1040_v15  ;;  %v1044_v17 = vld [vmem:[%s1653_s20 + $0x48] sm:$0xff]  ;;  %v1046_v18 = vld [vmem:[%s1653_s20 + $0x50] sm:$0xff]  ;;  %s1356_s25 = sshll.u32 %s2787_s24, 9  ;;  %s2776_s22 = smov %s2787_s24 }
  0xdd   : >> { %1043 = vst [vmem:[%s1649_s19 + $0x40] sm:$0xff] %v1042_v16  ;;  %v1048_v19 = vld [vmem:[%s1653_s20 + $0x58] sm:$0xff]  ;;  %1045 = vst [vmem:[%s1649_s19 + $0x48] sm:$0xff] %v1044_v17  ;;  %v1050_v20 = vld [vmem:[%s1653_s20 + $0x60] sm:$0xff]  ;;  %s2624_s26 = scalar_lea.vmem %s1779_s6, %s1356_s25 [#allocation4]   ;;  %s2627_s27 = scalar_lea.vmem %s2347_s11, %s1356_s25  }
  0xde   : >> { %1047 = vst [vmem:[%s1649_s19 + $0x50] sm:$0xff] %v1046_v18  ;;  %1049 = vst [vmem:[%s1649_s19 + $0x58] sm:$0xff] %v1048_v19  ;;  %v1052_v21 = vld [vmem:[%s1653_s20 + $0x68] sm:$0xff]  ;;  %v1054_v22 = vld [vmem:[%s1653_s20 + $0x70] sm:$0xff] }
  0xdf   : >> { %1051 = vst [vmem:[%s1649_s19 + $0x60] sm:$0xff] %v1050_v20  ;;  %1053 = vst [vmem:[%s1649_s19 + $0x68] sm:$0xff] %v1052_v21  ;;  %v1056_v23 = vld [vmem:[%s1653_s20 + $0x78] sm:$0xff]  ;;  %v1058_v24 = vld [vmem:[%s1653_s20 + $0x80] sm:$0xff] }
  0xe0   : >> { %1055 = vst [vmem:[%s1649_s19 + $0x70] sm:$0xff] %v1054_v22  ;;  %v1060_v25 = vld [vmem:[%s1653_s20 + $0x88] sm:$0xff]  ;;  %1057 = vst [vmem:[%s1649_s19 + $0x78] sm:$0xff] %v1056_v23  ;;  %v1062_v26 = vld [vmem:[%s1653_s20 + $0x90] sm:$0xff] }
  0xe1   : >> { %1059 = vst [vmem:[%s1649_s19 + $0x80] sm:$0xff] %v1058_v24  ;;  %1061 = vst [vmem:[%s1649_s19 + $0x88] sm:$0xff] %v1060_v25  ;;  %v1064_v27 = vld [vmem:[%s1653_s20 + $0x98] sm:$0xff]  ;;  %v1066_v28 = vld [vmem:[%s1653_s20 + $0xa0] sm:$0xff] }
  0xe2   : >> { %1063 = vst [vmem:[%s1649_s19 + $0x90] sm:$0xff] %v1062_v26  ;;  %1065 = vst [vmem:[%s1649_s19 + $0x98] sm:$0xff] %v1064_v27  ;;  %v1068_v29 = vld [vmem:[%s1653_s20 + $0xa8] sm:$0xff]  ;;  %v1070_v30 = vld [vmem:[%s1653_s20 + $0xb0] sm:$0xff] }
  0xe3   : >> { %1067 = vst [vmem:[%s1649_s19 + $0xa0] sm:$0xff] %v1066_v28  ;;  %v1072_v31 = vld [vmem:[%s1653_s20 + $0xb8] sm:$0xff]  ;;  %1069 = vst [vmem:[%s1649_s19 + $0xa8] sm:$0xff] %v1068_v29  ;;  %v1074_v32 = vld [vmem:[%s1653_s20 + $0xc0] sm:$0xff] }
  0xe4   : >> { %1071 = vst [vmem:[%s1649_s19 + $0xb0] sm:$0xff] %v1070_v30  ;;  %1073 = vst [vmem:[%s1649_s19 + $0xb8] sm:$0xff] %v1072_v31  ;;  %v1076_v33 = vld [vmem:[%s1653_s20 + $0xc8] sm:$0xff]  ;;  %v1078_v34 = vld [vmem:[%s1653_s20 + $0xd0] sm:$0xff] }
  0xe5   : >> { %1075 = vst [vmem:[%s1649_s19 + $0xc0] sm:$0xff] %v1074_v32  ;;  %1077 = vst [vmem:[%s1649_s19 + $0xc8] sm:$0xff] %v1076_v33  ;;  %v1080_v35 = vld [vmem:[%s1653_s20 + $0xd8] sm:$0xff]  ;;  %v1082_v36 = vld [vmem:[%s1653_s20 + $0xe0] sm:$0xff] }
  0xe6   : >> { %1079 = vst [vmem:[%s1649_s19 + $0xd0] sm:$0xff] %v1078_v34  ;;  %v1084_v37 = vld [vmem:[%s1653_s20 + $0xe8] sm:$0xff]  ;;  %1081 = vst [vmem:[%s1649_s19 + $0xd8] sm:$0xff] %v1080_v35  ;;  %v1086_v38 = vld [vmem:[%s1653_s20 + $0xf0] sm:$0xff] }
  0xe7   : >> { %1083 = vst [vmem:[%s1649_s19 + $0xe0] sm:$0xff] %v1082_v36  ;;  %1085 = vst [vmem:[%s1649_s19 + $0xe8] sm:$0xff] %v1084_v37  ;;  %v1088_v39 = vld [vmem:[%s1653_s20 + $0xf8] sm:$0xff]  ;;  %v1090_v40 = vld [vmem:[%s1653_s20 + $0x100] sm:$0xff] }
  0xe8   : >> { %1087 = vst [vmem:[%s1649_s19 + $0xf0] sm:$0xff] %v1086_v38  ;;  %1089 = vst [vmem:[%s1649_s19 + $0xf8] sm:$0xff] %v1088_v39  ;;  %v1092_v41 = vld [vmem:[%s1653_s20 + $0x108] sm:$0xff]  ;;  %v1094_v42 = vld [vmem:[%s1653_s20 + $0x110] sm:$0xff] }
  0xe9   : >> { %1091 = vst [vmem:[%s1649_s19 + $0x100] sm:$0xff] %v1090_v40  ;;  %v1096_v43 = vld [vmem:[%s1653_s20 + $0x118] sm:$0xff]  ;;  %1093 = vst [vmem:[%s1649_s19 + $0x108] sm:$0xff] %v1092_v41  ;;  %v1098_v44 = vld [vmem:[%s1653_s20 + $0x120] sm:$0xff] }
  0xea   : >> { %1095 = vst [vmem:[%s1649_s19 + $0x110] sm:$0xff] %v1094_v42  ;;  %1097 = vst [vmem:[%s1649_s19 + $0x118] sm:$0xff] %v1096_v43  ;;  %v1100_v45 = vld [vmem:[%s1653_s20 + $0x128] sm:$0xff]  ;;  %v1102_v46 = vld [vmem:[%s1653_s20 + $0x130] sm:$0xff] }
  0xeb   : >> { %1099 = vst [vmem:[%s1649_s19 + $0x120] sm:$0xff] %v1098_v44  ;;  %1101 = vst [vmem:[%s1649_s19 + $0x128] sm:$0xff] %v1100_v45  ;;  %v1104_v47 = vld [vmem:[%s1653_s20 + $0x138] sm:$0xff]  ;;  %v1106_v48 = vld [vmem:[%s1653_s20 + $0x140] sm:$0xff] }
  0xec   : >> { %1103 = vst [vmem:[%s1649_s19 + $0x130] sm:$0xff] %v1102_v46  ;;  %v1108_v49 = vld [vmem:[%s1653_s20 + $0x148] sm:$0xff]  ;;  %1105 = vst [vmem:[%s1649_s19 + $0x138] sm:$0xff] %v1104_v47  ;;  %v1110_v50 = vld [vmem:[%s1653_s20 + $0x150] sm:$0xff] }
  0xed   : >> { %1107 = vst [vmem:[%s1649_s19 + $0x140] sm:$0xff] %v1106_v48  ;;  %1109 = vst [vmem:[%s1649_s19 + $0x148] sm:$0xff] %v1108_v49  ;;  %v1112_v51 = vld [vmem:[%s1653_s20 + $0x158] sm:$0xff]  ;;  %v1114_v52 = vld [vmem:[%s1653_s20 + $0x160] sm:$0xff] }
  0xee   : >> { %1111 = vst [vmem:[%s1649_s19 + $0x150] sm:$0xff] %v1110_v50  ;;  %1113 = vst [vmem:[%s1649_s19 + $0x158] sm:$0xff] %v1112_v51  ;;  %v1116_v53 = vld [vmem:[%s1653_s20 + $0x168] sm:$0xff]  ;;  %v1118_v54 = vld [vmem:[%s1653_s20 + $0x170] sm:$0xff] }
  0xef   : >> { %1115 = vst [vmem:[%s1649_s19 + $0x160] sm:$0xff] %v1114_v52  ;;  %v1120_v55 = vld [vmem:[%s1653_s20 + $0x178] sm:$0xff]  ;;  %1117 = vst [vmem:[%s1649_s19 + $0x168] sm:$0xff] %v1116_v53  ;;  %v1122_v56 = vld [vmem:[%s1653_s20 + $0x180] sm:$0xff] }
  0xf0   : >> { %1119 = vst [vmem:[%s1649_s19 + $0x170] sm:$0xff] %v1118_v54  ;;  %1121 = vst [vmem:[%s1649_s19 + $0x178] sm:$0xff] %v1120_v55  ;;  %v1124_v57 = vld [vmem:[%s1653_s20 + $0x188] sm:$0xff]  ;;  %v1126_v58 = vld [vmem:[%s1653_s20 + $0x190] sm:$0xff] }
  0xf1   : >> { %1123 = vst [vmem:[%s1649_s19 + $0x180] sm:$0xff] %v1122_v56  ;;  %1125 = vst [vmem:[%s1649_s19 + $0x188] sm:$0xff] %v1124_v57  ;;  %v1128_v59 = vld [vmem:[%s1653_s20 + $0x198] sm:$0xff]  ;;  %v1130_v60 = vld [vmem:[%s1653_s20 + $0x1a0] sm:$0xff] }
  0xf2   : >> { %1127 = vst [vmem:[%s1649_s19 + $0x190] sm:$0xff] %v1126_v58  ;;  %v1132_v61 = vld [vmem:[%s1653_s20 + $0x1a8] sm:$0xff]  ;;  %1129 = vst [vmem:[%s1649_s19 + $0x198] sm:$0xff] %v1128_v59  ;;  %v1134_v62 = vld [vmem:[%s1653_s20 + $0x1b0] sm:$0xff]  ;;  %1022 = sbr.rel (!%p1019_p7) target bundleno = 216 (0xd8), region = 168 }
  0xf3   : >> { %1131 = vst [vmem:[%s1649_s19 + $0x1a0] sm:$0xff] %v1130_v60  ;;  %1133 = vst [vmem:[%s1649_s19 + $0x1a8] sm:$0xff] %v1132_v61  ;;  %v1136_v63 = vld [vmem:[%s1653_s20 + $0x1b8] sm:$0xff]  ;;  %v1138_v1 = vld [vmem:[%s1653_s20 + $0x1c0] sm:$0xff] }
  0xf4   : >> { %1135 = vst [vmem:[%s1649_s19 + $0x1b0] sm:$0xff] %v1134_v62  ;;  %1137 = vst [vmem:[%s1649_s19 + $0x1b8] sm:$0xff] %v1136_v63  ;;  %v1140_v3 = vld [vmem:[%s1653_s20 + $0x1c8] sm:$0xff]  ;;  %v1142_v4 = vld [vmem:[%s1653_s20 + $0x1d0] sm:$0xff] }
  0xf5   : >> { %1139 = vst [vmem:[%s1649_s19 + $0x1c0] sm:$0xff] %v1138_v1  ;;  %v1144_v5 = vld [vmem:[%s1653_s20 + $0x1d8] sm:$0xff]  ;;  %1141 = vst [vmem:[%s1649_s19 + $0x1c8] sm:$0xff] %v1140_v3  ;;  %v1146_v6 = vld [vmem:[%s1653_s20 + $0x1e0] sm:$0xff] }
  0xf6   : >> { %1143 = vst [vmem:[%s1649_s19 + $0x1d0] sm:$0xff] %v1142_v4  ;;  %1145 = vst [vmem:[%s1649_s19 + $0x1d8] sm:$0xff] %v1144_v5  ;;  %v1148_v7 = vld [vmem:[%s1653_s20 + $0x1e8] sm:$0xff]  ;;  %v1150_v8 = vld [vmem:[%s1653_s20 + $0x1f0] sm:$0xff] }
  0xf7   : >> { %1147 = vst [vmem:[%s1649_s19 + $0x1e0] sm:$0xff] %v1146_v6  ;;  %1149 = vst [vmem:[%s1649_s19 + $0x1e8] sm:$0xff] %v1148_v7  ;;  %v1152_v0 = vld [vmem:[%s1653_s20 + $0x1f8] sm:$0xff]  ;;  %s2775_s20 = smov %s2624_s26 }
  0xf8   : >> { %1151 = vst [vmem:[%s1649_s19 + $0x1f0] sm:$0xff] %v1150_v8  ;;  %1153 = vst [vmem:[%s1649_s19 + $0x1f8] sm:$0xff] %v1152_v0  ;;  %s2774_s19 = smov %s2627_s27 }
  0xf9 PF: > { %s2733_s28 = sand.u32 63, %s1013_s15   ;;  %s1370_s29 = sshll.u32 %s2557_s1, 13 }
  0xfa   : > { %s1165_s30 = sshra.s32 %s1370_s29, 4  ;;  %p1361_p8 = scmp.le.s32.totalorder %s2733_s28, 0 }
  0xfb   : > { %s1166_s4 = scalar_lea.vmem %s1779_s6, %s1165_s30 [#allocation4]   ;;  %s1169_s5 = scalar_lea.vmem %s2347_s11, %s1165_s30  }
  0xfc   : > { %1305 = sbr.rel (%p1361_p8) target bundleno = 269 (0x10d), region = 173  ;;  %s1663_s7 = smov (!%p1361_p8), %s1169_s5  }
  0xfd   : > { %s1667_s8 = smov (!%p1361_p8), %s1166_s4   ;;  %s1671_s9 = smov (!%p1361_p8), 0  }
  0xfe   : > { %s1675_s10 = smov (!%p1361_p8), 0  }
 0x103 LB: >> { %v1181_v2 = vld [vmem:[%s1669_s8] sm:$0xff]  ;;  %s1183_s15 = sadd.s32 1, %s1673_s9  ;;  %s1175_s10 = sadd.s32 1, %s1677_s10   ;;  %s1677_s10 = sphi %s1675_s10, %s1175_s10   ;;  %s1673_s9 = sphi %s1671_s9, %s1672_s9   ;;  %s1669_s8 = sphi %s1667_s8, %s1188_s8   ;;  %s1665_s7 = sphi %s1663_s7, %s1189_s7  }
 0x104   : >> { %1182 = vst [vmem:[%s1665_s7] sm:$0xff] %v1181_v2  ;;  %p1184_p9 = scmp.ge.s32.totalorder %s1183_s15, %s2733_s28  ;;  %p1174_p10 = scmp.ge.s32.totalorder %s1175_s10, %s2733_s28 }
 0x106   : >> { %s2789_s15 = smov (%p1184_p9, %s1183_s15), 0  ;;  %1177 = sbr.rel (!%p1174_p10) target bundleno = 259 (0x103), region = 179 }
 0x107   : >> { %s1362_s1 = sshll.u32 %s2789_s15, 3  ;;  %s1672_s9 = smov %s2789_s15  }
 0x108   : >> { %s1188_s8 = scalar_lea.vmem %s1166_s4, %s1362_s1 [#allocation4]   ;;  %s1189_s7 = scalar_lea.vmem %s1169_s5, %s1362_s1  }
 0x10d PF: > { %s1679_s19 = smov 0  }
 0x10e   : > { %s1190_s20 = sshllo.u32 %s1679_s19, %s2353_s14 }
 0x10f   : > { %v1199_v9 = vld [vmem:[%s1010_s16] sm:%s1190_s20] }
 0x110   : > { %1200 = vst [vmem:[%s1012_s18] sm:%s1190_s20] %v1199_v9 }
 0x111 PF: > { %p1364_p11 = scmp.ge.u32.totalorder %s2349_s13, 8 }
 0x112   : > { %s1680_s22 = smov (!%p1364_p11), 0  }
 0x113   : > { %811 = sbr.rel (%p1364_p11) target bundleno = 282 (0x11a), region = 48  ;;  %s812_s23 = sshllo.u32 (!%p1364_p11), %s1680_s22, %s2349_s13 }
 0x114   : > { %v821_v10 = vld [vmem:[%s1779_s6] sm:%s812_s23] (!%p1364_p11) }
 0x115   : > { %822 = vst [vmem:[%s2347_s11] sm:%s812_s23] (!%p1364_p11), %v821_v10 }
 0x11a PF: > { %p12_p12 = scmp.ge.s32.totalorder %s1720_s2, 4   ;;  %s2777_s16 = smov %s1609_s17 }
 0x11b   : > { %s2778_s17 = smov %s1727_s21  ;;  %s2779_s18 = smov %s1720_s2 }
 0x11c   :  { %14 = sbr.rel (!%p12_p12) target bundleno = 5 (0x5), region = 190 }

</bundles_post_ra>
